<compile_context>
chip_gen: v7x
topology: tpu7x:2x2x1
jax: 0.10.0
libtpu: 0.0.40
codegen_flags: <defaults>
</compile_context>

<pallas_src>
import jax
import jax.numpy as jnp
from jax.experimental import pallas as pl
from jax.experimental.pallas import tpu as pltpu


def _qnet_lstm_kernel(obsT_ref, w1_ref, b1_ref, w2_ref, b2_ref,
                      wih_ref, whh_ref, bl_ref, mask_ref,
                      yT_ref, hn_ref, cn_ref):
    H, T = yT_ref.shape                      # hidden size (num_actions), seq len

    # ---- feed-forward trunk: all MXU work, fully outside the recurrence ----
    x = jnp.dot(w1_ref[...], obsT_ref[...], preferred_element_type=jnp.float32)
    x = jnp.maximum(x + b1_ref[...], 0.0)                        # (h1, T)
    x = jnp.dot(w2_ref[...], x, preferred_element_type=jnp.float32)
    x = jnp.maximum(x + b2_ref[...], 0.0)                        # (h2, T)
    # gxT[:, t] = W_ih @ x_t + (b_ih + b_hh); i/f/o rows pre-scaled by 0.5.
    gxT = jnp.dot(wih_ref[...], x, preferred_element_type=jnp.float32) + bl_ref[...]

    whh = whh_ref[...]                                           # (4H, H) resident
    mask = mask_ref[...]                                         # (1, T)

    # identity used for the per-step (H,1)->(1,H) layout flip (VPU+XLU only)
    rows = jax.lax.broadcasted_iota(jnp.int32, (H, H), 0)
    cols = jax.lax.broadcasted_iota(jnp.int32, (H, H), 1)
    eye = (rows == cols).astype(jnp.float32)

    neg_inf = jnp.float32(-jnp.inf)
    h = jnp.zeros((H, 1), jnp.float32)       # hidden state, column layout
    c = jnp.zeros((H, 1), jnp.float32)       # cell state, column layout

    for t in range(T):                       # fully unrolled: T static & small
        pre = gxT[:, t:t + 1]                # (4H, 1), loop-invariant operand
        if t > 0:
            # MXU-free recurrent contribution W_hh @ h.
            h_row = jnp.sum(h * eye, axis=0, keepdims=True)          # (1, H)
            pre = pre + jnp.sum(whh * h_row, axis=1, keepdims=True)  # (4H, 1)
        a = jnp.tanh(pre)                    # ONE EUP op covers all four gates
        i_g = 0.5 * a[0 * H:1 * H, :] + 0.5  # sigmoid via folded 0.5 pre-scale
        f_g = 0.5 * a[1 * H:2 * H, :] + 0.5
        g_g = a[2 * H:3 * H, :]
        o_g = 0.5 * a[3 * H:4 * H, :] + 0.5
        c = i_g * g_g if t == 0 else f_g * c + i_g * g_g
        h = o_g * jnp.tanh(c)
        # store as produced: idle vst slot, off the recurrence chain
        yT_ref[:, t:t + 1] = jnp.where(mask[0:1, t:t + 1] != 0.0, h, neg_inf)

    hn_ref[...] = h
    cn_ref[...] = c


def _prep_kernel_operands(params):
    """PyTorch-layout params -> kernel operands (biases as columns, gate
    pre-scale folded into the i/f/o rows of W_ih / W_hh / bias)."""
    fc1_w, fc1_b, fc2_w, fc2_b, w_ih, w_hh, b_ih, b_hh = params
    H = w_hh.shape[1]
    gate_scale = jnp.concatenate([
        jnp.full((H,), 0.5), jnp.full((H,), 0.5),
        jnp.ones((H,)), jnp.full((H,), 0.5)]).astype(jnp.float32)
    wih_s = w_ih * gate_scale[:, None]
    whh_s = w_hh * gate_scale[:, None]
    bl_c = ((b_ih + b_hh) * gate_scale).reshape(4 * H, 1)
    return (fc1_w, fc1_b.reshape(-1, 1), fc2_w, fc2_b.reshape(-1, 1),
            wih_s, whh_s, bl_c)


@jax.jit
def qnet_lstm_forward(obs, params, mask=None):
    """obs: (T, input_size) f32; mask: (T,) / (T,1) f32 or None."""
    T = obs.shape[0]
    w1, b1c, w2, b2c, wih_s, whh_s, bl_c = _prep_kernel_operands(params)
    H = whh_s.shape[1]
    maskT = (jnp.ones((1, T), jnp.float32) if mask is None
             else jnp.ravel(mask).astype(jnp.float32).reshape(1, T))

    vmem = pl.BlockSpec(memory_space=pltpu.MemorySpace.VMEM)
    yT, hn, cn = pl.pallas_call(
        _qnet_lstm_kernel,
        out_shape=(jax.ShapeDtypeStruct((H, T), jnp.float32),   # LSTM outputs^T
                   jax.ShapeDtypeStruct((H, 1), jnp.float32),   # h_n
                   jax.ShapeDtypeStruct((H, 1), jnp.float32)),  # c_n
        in_specs=[vmem] * 9,
        out_specs=(vmem, vmem, vmem),
    )(obs.T, w1, b1c, w2, b2c, wih_s, whh_s, bl_c, maskT)
    return yT.T, (hn.reshape(1, H), cn.reshape(1, H))


@jax.jit
def qnet_lstm_forward_batched(obs_b, params, mask_b=None):
    """obs_b: (B, T, input_size); mask_b: (B, T) or None.
    One grid step per sequence; batch axis marked "parallel" so v7x's two
    TensorCores split it (no-op on single-core v5e/v6e)."""
    B, T, IN = obs_b.shape
    w1, b1c, w2, b2c, wih_s, whh_s, bl_c = _prep_kernel_operands(params)
    H = whh_s.shape[1]
    obsT_b = jnp.transpose(obs_b, (0, 2, 1))                    # (B, IN, T)
    maskT_b = (jnp.ones((B, 1, T), jnp.float32) if mask_b is None
               else mask_b.astype(jnp.float32).reshape(B, 1, T))

    def seq_spec(*trail):       # per-sequence arrays, leading batch dim squeezed
        return pl.BlockSpec((None,) + trail, lambda b: (b,) + (0,) * len(trail))

    def shared_spec(arr):       # weights: same full block every grid step
        nd = arr.ndim
        return pl.BlockSpec(arr.shape, lambda b: (0,) * nd)

    yT_b, hn_b, cn_b = pl.pallas_call(
        _qnet_lstm_kernel,
        out_shape=(jax.ShapeDtypeStruct((B, H, T), jnp.float32),
                   jax.ShapeDtypeStruct((B, H, 1), jnp.float32),
                   jax.ShapeDtypeStruct((B, H, 1), jnp.float32)),
        grid=(B,),
        in_specs=[seq_spec(IN, T), shared_spec(w1), shared_spec(b1c),
                  shared_spec(w2), shared_spec(b2c), shared_spec(wih_s),
                  shared_spec(whh_s), shared_spec(bl_c), seq_spec(1, T)],
        out_specs=(seq_spec(H, T), seq_spec(H, 1), seq_spec(H, 1)),
        compiler_params=pltpu.CompilerParams(dimension_semantics=("parallel",)),
    )(obsT_b, w1, b1c, w2, b2c, wih_s, whh_s, bl_c, maskT_b)
    return (jnp.transpose(yT_b, (0, 2, 1)),
            (hn_b.reshape(B, 1, H), cn_b.reshape(B, 1, H)))


def qnet_lstm_reference(obs, params, mask=None):
    """Pure-JAX reference of the PyTorch module's forward (for validation)."""
    fc1_w, fc1_b, fc2_w, fc2_b, w_ih, w_hh, b_ih, b_hh = params
    H = w_hh.shape[1]
    x = jax.nn.relu(obs @ fc1_w.T + fc1_b)
    x = jax.nn.relu(x @ fc2_w.T + fc2_b)

    def step(carry, x_t):
        h, c = carry
        z = w_ih @ x_t + b_ih + w_hh @ h + b_hh
        i = jax.nn.sigmoid(z[0 * H:1 * H])
        f = jax.nn.sigmoid(z[1 * H:2 * H])
        g = jnp.tanh(z[2 * H:3 * H])
        o = jax.nn.sigmoid(z[3 * H:4 * H])
        c = f * c + i * g
        h = o * jnp.tanh(c)
        return (h, c), h

    (h_n, c_n), ys = jax.lax.scan(step, (jnp.zeros((H,)), jnp.zeros((H,))), x)
    y = ys
    if mask is not None:
        y = jnp.where(jnp.ravel(mask)[:, None] != 0.0, y, -jnp.inf)
    return y, (h_n[None, :], c_n[None, :])


def init_params(key, input_size, num_actions, hidden_layer1=64, hidden_layer2=64):
    """PyTorch-layout params with PyTorch-style U(-1/sqrt(fan), +1/sqrt(fan)) init."""
    ks = jax.random.split(key, 8)

    def u(k, shape, fan):
        b = 1.0 / jnp.sqrt(jnp.float32(fan))
        return jax.random.uniform(k, shape, jnp.float32, -b, b)

    H = num_actions
    fc1_w = u(ks[0], (hidden_layer1, input_size), input_size)
    fc1_b = u(ks[1], (hidden_layer1,), input_size)
    fc2_w = u(ks[2], (hidden_layer2, hidden_layer1), hidden_layer1)
    fc2_b = u(ks[3], (hidden_layer2,), hidden_layer1)
    w_ih = u(ks[4], (4 * H, hidden_layer2), H)   # nn.LSTM: U(-1/sqrt(H), 1/sqrt(H))
    w_hh = u(ks[5], (4 * H, H), H)
    b_ih = u(ks[6], (4 * H,), H)
    b_hh = u(ks[7], (4 * H,), H)
    return (fc1_w, fc1_b, fc2_w, fc2_b, w_ih, w_hh, b_ih, b_hh)


if __name__ == "__main__":
    input_size, num_actions, T, B = 16, 8, 8, 2

    key = jax.random.PRNGKey(0)
    pkey, k1, k2 = jax.random.split(key, 3)
    params = init_params(pkey, input_size, num_actions)
    obs = jax.random.normal(k1, (T, input_size), jnp.float32)

    # ---- unbatched, no mask: validate against the pure-JAX reference -------
    y, (h_n, c_n) = qnet_lstm_forward(obs, params, None)
    jax.block_until_ready((y, h_n, c_n))
    y_ref, (h_ref, c_ref) = qnet_lstm_reference(obs, params, None)
    assert y.shape == (T, num_actions)
    assert h_n.shape == (1, num_actions) and c_n.shape == (1, num_actions)
    assert bool(jnp.allclose(y, y_ref, rtol=1e-3, atol=1e-4))
    assert bool(jnp.allclose(h_n, h_ref, rtol=1e-3, atol=1e-4))
    assert bool(jnp.allclose(c_n, c_ref, rtol=1e-3, atol=1e-4))
    assert bool(jnp.allclose(y[-1], h_n[0]))          # last output == h_n

    # ---- unbatched, masked --------------------------------------------------
    mask = jnp.ones((T,), jnp.float32).at[2].set(0.0).at[5].set(0.0)
    y_m, (h_m, c_m) = qnet_lstm_forward(obs, params, mask)
    jax.block_until_ready(y_m)
    assert bool(jnp.all(jnp.isneginf(y_m[2]))) and bool(jnp.all(jnp.isneginf(y_m[5])))
    keep = jnp.array([0, 1, 3, 4, 6, 7])
    assert bool(jnp.all(jnp.isfinite(y_m[keep])))
    # masking must not perturb the recurrence state
    assert bool(jnp.allclose(h_m, h_n)) and bool(jnp.allclose(c_m, c_n))

    # ---- batched (grid over sequences; "parallel" for v7x's 2 TCs) ---------
    obs2 = jax.random.normal(k2, (T, input_size), jnp.float32)
    obs_b = jnp.stack([obs, obs2])                               # (B, T, IN)
    mask_b = jnp.stack([jnp.ones((T,), jnp.float32), mask])      # (B, T)
    y_b, (hn_b, cn_b) = qnet_lstm_forward_batched(obs_b, params, mask_b)
    jax.block_until_ready((y_b, hn_b, cn_b))
    assert y_b.shape == (B, T, num_actions)
    assert hn_b.shape == (B, 1, num_actions) and cn_b.shape == (B, 1, num_actions)
    assert bool(jnp.allclose(y_b[0], y, rtol=1e-6, atol=1e-6))
    assert bool(jnp.allclose(hn_b[0], h_n)) and bool(jnp.allclose(cn_b[0], c_n))
    assert bool(jnp.all(jnp.isneginf(y_b[1, 2]))) and bool(jnp.all(jnp.isneginf(y_b[1, 5])))
    y2_ref, (h2_ref, _) = qnet_lstm_reference(obs2, params, mask)
    assert bool(jnp.allclose(y_b[1][keep], y2_ref[keep], rtol=1e-3, atol=1e-4))
    assert bool(jnp.allclose(hn_b[1], h2_ref, rtol=1e-3, atol=1e-4))

    print("KERNEL_OK")
</pallas_src>

<mosaic_0001>
module attributes {stable_mosaic.version = 11 : i64} {
  func.func @_qnet_lstm_kernel(%arg0: memref<16x8xf32, #tpu.memory_space<vmem>>, %arg1: memref<64x16xf32, #tpu.memory_space<vmem>>, %arg2: memref<64x1xf32, #tpu.memory_space<vmem>>, %arg3: memref<64x64xf32, #tpu.memory_space<vmem>>, %arg4: memref<64x1xf32, #tpu.memory_space<vmem>>, %arg5: memref<32x64xf32, #tpu.memory_space<vmem>>, %arg6: memref<32x8xf32, #tpu.memory_space<vmem>>, %arg7: memref<32x1xf32, #tpu.memory_space<vmem>>, %arg8: memref<1x8xf32, #tpu.memory_space<vmem>>, %arg9: memref<8x8xf32, #tpu.memory_space<vmem>>, %arg10: memref<8x1xf32, #tpu.memory_space<vmem>>, %arg11: memref<8x1xf32, #tpu.memory_space<vmem>>) attributes {dimension_semantics = [], scalar_prefetch = 0 : i64, scratch_operands = 0 : i64, tpu.core_type = #tpu.core_type<tc>} {
    %c0 = arith.constant 0 : index
    %c0_0 = arith.constant 0 : index
    %0 = vector.load %arg1[%c0, %c0_0] : memref<64x16xf32, #tpu.memory_space<vmem>>, vector<64x16xf32>
    %c0_1 = arith.constant 0 : index
    %c0_2 = arith.constant 0 : index
    %1 = vector.load %arg0[%c0_1, %c0_2] : memref<16x8xf32, #tpu.memory_space<vmem>>, vector<16x8xf32>
    %cst = arith.constant dense<0.000000e+00> : vector<64x8xf32>
    %2 = tpu.matmul %0, %1, %cst {dimension_numbers = #tpu.dot_dimension_numbers<[1], [0], [0], [1], [0, 0, 1, 1], [], []>} : vector<64x16xf32>, vector<16x8xf32>, vector<64x8xf32> -> vector<64x8xf32>
    %c0_3 = arith.constant 0 : index
    %c0_4 = arith.constant 0 : index
    %3 = vector.load %arg2[%c0_3, %c0_4] : memref<64x1xf32, #tpu.memory_space<vmem>>, vector<64x1xf32>
    %4 = vector.broadcast %3 : vector<64x1xf32> to vector<64x8xf32>
    %5 = arith.addf %2, %4 : vector<64x8xf32>
    %cst_5 = arith.constant 0.000000e+00 : f32
    %6 = vector.broadcast %cst_5 : f32 to vector<64x8xf32>
    %7 = arith.maximumf %5, %6 : vector<64x8xf32>
    %c0_6 = arith.constant 0 : index
    %c0_7 = arith.constant 0 : index
    %8 = vector.load %arg3[%c0_6, %c0_7] : memref<64x64xf32, #tpu.memory_space<vmem>>, vector<64x64xf32>
    %cst_8 = arith.constant dense<0.000000e+00> : vector<64x8xf32>
    %9 = tpu.matmul %8, %7, %cst_8 {dimension_numbers = #tpu.dot_dimension_numbers<[1], [0], [0], [1], [0, 0, 1, 1], [], []>} : vector<64x64xf32>, vector<64x8xf32>, vector<64x8xf32> -> vector<64x8xf32>
    %c0_9 = arith.constant 0 : index
    %c0_10 = arith.constant 0 : index
    %10 = vector.load %arg4[%c0_9, %c0_10] : memref<64x1xf32, #tpu.memory_space<vmem>>, vector<64x1xf32>
    %11 = vector.broadcast %10 : vector<64x1xf32> to vector<64x8xf32>
    %12 = arith.addf %9, %11 : vector<64x8xf32>
    %cst_11 = arith.constant 0.000000e+00 : f32
    %13 = vector.broadcast %cst_11 : f32 to vector<64x8xf32>
    %14 = arith.maximumf %12, %13 : vector<64x8xf32>
    %c0_12 = arith.constant 0 : index
    %c0_13 = arith.constant 0 : index
    %15 = vector.load %arg5[%c0_12, %c0_13] : memref<32x64xf32, #tpu.memory_space<vmem>>, vector<32x64xf32>
    %cst_14 = arith.constant dense<0.000000e+00> : vector<32x8xf32>
    %16 = tpu.matmul %15, %14, %cst_14 {dimension_numbers = #tpu.dot_dimension_numbers<[1], [0], [0], [1], [0, 0, 1, 1], [], []>} : vector<32x64xf32>, vector<64x8xf32>, vector<32x8xf32> -> vector<32x8xf32>
    %c0_15 = arith.constant 0 : index
    %c0_16 = arith.constant 0 : index
    %17 = vector.load %arg7[%c0_15, %c0_16] : memref<32x1xf32, #tpu.memory_space<vmem>>, vector<32x1xf32>
    %18 = vector.broadcast %17 : vector<32x1xf32> to vector<32x8xf32>
    %19 = arith.addf %16, %18 : vector<32x8xf32>
    %c0_17 = arith.constant 0 : index
    %c0_18 = arith.constant 0 : index
    %20 = vector.load %arg6[%c0_17, %c0_18] : memref<32x8xf32, #tpu.memory_space<vmem>>, vector<32x8xf32>
    %c0_19 = arith.constant 0 : index
    %c0_20 = arith.constant 0 : index
    %21 = vector.load %arg8[%c0_19, %c0_20] : memref<1x8xf32, #tpu.memory_space<vmem>>, vector<1x8xf32>
    %22 = tpu.iota {dimensions = array<i32: 0>} : vector<8x8xi32>
    %23 = tpu.iota {dimensions = array<i32: 1>} : vector<8x8xi32>
    %24 = arith.cmpi eq, %22, %23 : vector<8x8xi32>
    %25 = arith.extui %24 : vector<8x8xi1> to vector<8x8xi32>
    %26 = arith.sitofp %25 : vector<8x8xi32> to vector<8x8xf32>
    %27 = vector.extract_strided_slice %19 {offsets = [0, 0], sizes = [32, 1], strides = [1, 1]} : vector<32x8xf32> to vector<32x1xf32>
    %28 = math.tanh %27 : vector<32x1xf32>
    %29 = vector.extract_strided_slice %28 {offsets = [0, 0], sizes = [8, 1], strides = [1, 1]} : vector<32x1xf32> to vector<8x1xf32>
    %cst_21 = arith.constant 5.000000e-01 : f32
    %30 = vector.broadcast %cst_21 : f32 to vector<8x1xf32>
    %31 = arith.mulf %30, %29 : vector<8x1xf32>
    %cst_22 = arith.constant 5.000000e-01 : f32
    %32 = vector.broadcast %cst_22 : f32 to vector<8x1xf32>
    %33 = arith.addf %31, %32 : vector<8x1xf32>
    %34 = vector.extract_strided_slice %28 {offsets = [16, 0], sizes = [8, 1], strides = [1, 1]} : vector<32x1xf32> to vector<8x1xf32>
    %35 = vector.extract_strided_slice %28 {offsets = [24, 0], sizes = [8, 1], strides = [1, 1]} : vector<32x1xf32> to vector<8x1xf32>
    %cst_23 = arith.constant 5.000000e-01 : f32
    %36 = vector.broadcast %cst_23 : f32 to vector<8x1xf32>
    %37 = arith.mulf %36, %35 : vector<8x1xf32>
    %cst_24 = arith.constant 5.000000e-01 : f32
    %38 = vector.broadcast %cst_24 : f32 to vector<8x1xf32>
    %39 = arith.addf %37, %38 : vector<8x1xf32>
    %40 = arith.mulf %33, %34 : vector<8x1xf32>
    %41 = math.tanh %40 : vector<8x1xf32>
    %42 = arith.mulf %39, %41 : vector<8x1xf32>
    %43 = vector.extract_strided_slice %21 {offsets = [0, 0], sizes = [1, 1], strides = [1, 1]} : vector<1x8xf32> to vector<1x1xf32>
    %cst_25 = arith.constant 0.000000e+00 : f32
    %44 = vector.broadcast %cst_25 : f32 to vector<1x1xf32>
    %45 = arith.cmpf one, %43, %44 : vector<1x1xf32>
    %cst_26 = arith.constant 0xFF800000 : f32
    %46 = vector.shape_cast %45 : vector<1x1xi1> to vector<1x1xi1>
    %47 = vector.broadcast %46 : vector<1x1xi1> to vector<8x1xi1>
    %48 = vector.broadcast %cst_26 : f32 to vector<8x1xf32>
    %49 = arith.select %47, %42, %48 : vector<8x1xi1>, vector<8x1xf32>
    %c0_27 = arith.constant 0 : index
    %c0_28 = arith.constant 0 : index
    %50 = vector.load %arg9[%c0_27, %c0_28] : memref<8x8xf32, #tpu.memory_space<vmem>>, vector<8x1xf32>
    tpu.vector_store %arg9[%c0_27, %c0_28], %49 {strides = array<i32>} : memref<8x8xf32, #tpu.memory_space<vmem>>, vector<8x1xf32>,
    %51 = vector.extract_strided_slice %19 {offsets = [0, 1], sizes = [32, 1], strides = [1, 1]} : vector<32x8xf32> to vector<32x1xf32>
    %52 = vector.broadcast %42 : vector<8x1xf32> to vector<8x8xf32>
    %53 = arith.mulf %52, %26 : vector<8x8xf32>
    %cst_29 = arith.constant dense<0.000000e+00> : vector<8xf32>
    %54 = vector.multi_reduction <add>, %53, %cst_29 [0] : vector<8x8xf32> to vector<8xf32>
    %55 = vector.shape_cast %54 : vector<8xf32> to vector<1x8xf32>
    %56 = vector.broadcast %55 : vector<1x8xf32> to vector<32x8xf32>
    %57 = arith.mulf %20, %56 : vector<32x8xf32>
    %cst_30 = arith.constant dense<0.000000e+00> : vector<32xf32>
    %58 = vector.multi_reduction <add>, %57, %cst_30 [1] : vector<32x8xf32> to vector<32xf32>
    %59 = vector.shape_cast %58 : vector<32xf32> to vector<32x1xf32>
    %60 = arith.addf %51, %59 : vector<32x1xf32>
    %61 = math.tanh %60 : vector<32x1xf32>
    %62 = vector.extract_strided_slice %61 {offsets = [0, 0], sizes = [8, 1], strides = [1, 1]} : vector<32x1xf32> to vector<8x1xf32>
    %cst_31 = arith.constant 5.000000e-01 : f32
    %63 = vector.broadcast %cst_31 : f32 to vector<8x1xf32>
    %64 = arith.mulf %63, %62 : vector<8x1xf32>
    %cst_32 = arith.constant 5.000000e-01 : f32
    %65 = vector.broadcast %cst_32 : f32 to vector<8x1xf32>
    %66 = arith.addf %64, %65 : vector<8x1xf32>
    %67 = vector.extract_strided_slice %61 {offsets = [8, 0], sizes = [8, 1], strides = [1, 1]} : vector<32x1xf32> to vector<8x1xf32>
    %cst_33 = arith.constant 5.000000e-01 : f32
    %68 = vector.broadcast %cst_33 : f32 to vector<8x1xf32>
    %69 = arith.mulf %68, %67 : vector<8x1xf32>
    %cst_34 = arith.constant 5.000000e-01 : f32
    %70 = vector.broadcast %cst_34 : f32 to vector<8x1xf32>
    %71 = arith.addf %69, %70 : vector<8x1xf32>
    %72 = vector.extract_strided_slice %61 {offsets = [16, 0], sizes = [8, 1], strides = [1, 1]} : vector<32x1xf32> to vector<8x1xf32>
    %73 = vector.extract_strided_slice %61 {offsets = [24, 0], sizes = [8, 1], strides = [1, 1]} : vector<32x1xf32> to vector<8x1xf32>
    %cst_35 = arith.constant 5.000000e-01 : f32
    %74 = vector.broadcast %cst_35 : f32 to vector<8x1xf32>
    %75 = arith.mulf %74, %73 : vector<8x1xf32>
    %cst_36 = arith.constant 5.000000e-01 : f32
    %76 = vector.broadcast %cst_36 : f32 to vector<8x1xf32>
    %77 = arith.addf %75, %76 : vector<8x1xf32>
    %78 = arith.mulf %71, %40 : vector<8x1xf32>
    %79 = arith.mulf %66, %72 : vector<8x1xf32>
    %80 = arith.addf %78, %79 : vector<8x1xf32>
    %81 = math.tanh %80 : vector<8x1xf32>
    %82 = arith.mulf %77, %81 : vector<8x1xf32>
    %83 = vector.extract_strided_slice %21 {offsets = [0, 1], sizes = [1, 1], strides = [1, 1]} : vector<1x8xf32> to vector<1x1xf32>
    %cst_37 = arith.constant 0.000000e+00 : f32
    %84 = vector.broadcast %cst_37 : f32 to vector<1x1xf32>
    %85 = arith.cmpf one, %83, %84 : vector<1x1xf32>
    %cst_38 = arith.constant 0xFF800000 : f32
    %86 = vector.shape_cast %85 : vector<1x1xi1> to vector<1x1xi1>
    %87 = vector.broadcast %86 : vector<1x1xi1> to vector<8x1xi1>
    %88 = vector.broadcast %cst_38 : f32 to vector<8x1xf32>
    %89 = arith.select %87, %82, %88 : vector<8x1xi1>, vector<8x1xf32>
    %c0_39 = arith.constant 0 : index
    %c1 = arith.constant 1 : index
    %90 = vector.load %arg9[%c0_39, %c1] : memref<8x8xf32, #tpu.memory_space<vmem>>, vector<8x1xf32>
    tpu.vector_store %arg9[%c0_39, %c1], %89 {strides = array<i32>} : memref<8x8xf32, #tpu.memory_space<vmem>>, vector<8x1xf32>,
    %91 = vector.extract_strided_slice %19 {offsets = [0, 2], sizes = [32, 1], strides = [1, 1]} : vector<32x8xf32> to vector<32x1xf32>
    %92 = vector.broadcast %82 : vector<8x1xf32> to vector<8x8xf32>
    %93 = arith.mulf %92, %26 : vector<8x8xf32>
    %cst_40 = arith.constant dense<0.000000e+00> : vector<8xf32>
    %94 = vector.multi_reduction <add>, %93, %cst_40 [0] : vector<8x8xf32> to vector<8xf32>
    %95 = vector.shape_cast %94 : vector<8xf32> to vector<1x8xf32>
    %96 = vector.broadcast %95 : vector<1x8xf32> to vector<32x8xf32>
    %97 = arith.mulf %20, %96 : vector<32x8xf32>
    %cst_41 = arith.constant dense<0.000000e+00> : vector<32xf32>
    %98 = vector.multi_reduction <add>, %97, %cst_41 [1] : vector<32x8xf32> to vector<32xf32>
    %99 = vector.shape_cast %98 : vector<32xf32> to vector<32x1xf32>
    %100 = arith.addf %91, %99 : vector<32x1xf32>
    %101 = math.tanh %100 : vector<32x1xf32>
    %102 = vector.extract_strided_slice %101 {offsets = [0, 0], sizes = [8, 1], strides = [1, 1]} : vector<32x1xf32> to vector<8x1xf32>
    %cst_42 = arith.constant 5.000000e-01 : f32
    %103 = vector.broadcast %cst_42 : f32 to vector<8x1xf32>
    %104 = arith.mulf %103, %102 : vector<8x1xf32>
    %cst_43 = arith.constant 5.000000e-01 : f32
    %105 = vector.broadcast %cst_43 : f32 to vector<8x1xf32>
    %106 = arith.addf %104, %105 : vector<8x1xf32>
    %107 = vector.extract_strided_slice %101 {offsets = [8, 0], sizes = [8, 1], strides = [1, 1]} : vector<32x1xf32> to vector<8x1xf32>
    %cst_44 = arith.constant 5.000000e-01 : f32
    %108 = vector.broadcast %cst_44 : f32 to vector<8x1xf32>
    %109 = arith.mulf %108, %107 : vector<8x1xf32>
    %cst_45 = arith.constant 5.000000e-01 : f32
    %110 = vector.broadcast %cst_45 : f32 to vector<8x1xf32>
    %111 = arith.addf %109, %110 : vector<8x1xf32>
    %112 = vector.extract_strided_slice %101 {offsets = [16, 0], sizes = [8, 1], strides = [1, 1]} : vector<32x1xf32> to vector<8x1xf32>
    %113 = vector.extract_strided_slice %101 {offsets = [24, 0], sizes = [8, 1], strides = [1, 1]} : vector<32x1xf32> to vector<8x1xf32>
    %cst_46 = arith.constant 5.000000e-01 : f32
    %114 = vector.broadcast %cst_46 : f32 to vector<8x1xf32>
    %115 = arith.mulf %114, %113 : vector<8x1xf32>
    %cst_47 = arith.constant 5.000000e-01 : f32
    %116 = vector.broadcast %cst_47 : f32 to vector<8x1xf32>
    %117 = arith.addf %115, %116 : vector<8x1xf32>
    %118 = arith.mulf %111, %80 : vector<8x1xf32>
    %119 = arith.mulf %106, %112 : vector<8x1xf32>
    %120 = arith.addf %118, %119 : vector<8x1xf32>
    %121 = math.tanh %120 : vector<8x1xf32>
    %122 = arith.mulf %117, %121 : vector<8x1xf32>
    %123 = vector.extract_strided_slice %21 {offsets = [0, 2], sizes = [1, 1], strides = [1, 1]} : vector<1x8xf32> to vector<1x1xf32>
    %cst_48 = arith.constant 0.000000e+00 : f32
    %124 = vector.broadcast %cst_48 : f32 to vector<1x1xf32>
    %125 = arith.cmpf one, %123, %124 : vector<1x1xf32>
    %cst_49 = arith.constant 0xFF800000 : f32
    %126 = vector.shape_cast %125 : vector<1x1xi1> to vector<1x1xi1>
    %127 = vector.broadcast %126 : vector<1x1xi1> to vector<8x1xi1>
    %128 = vector.broadcast %cst_49 : f32 to vector<8x1xf32>
    %129 = arith.select %127, %122, %128 : vector<8x1xi1>, vector<8x1xf32>
    %c0_50 = arith.constant 0 : index
    %c2 = arith.constant 2 : index
    %130 = vector.load %arg9[%c0_50, %c2] : memref<8x8xf32, #tpu.memory_space<vmem>>, vector<8x1xf32>
    tpu.vector_store %arg9[%c0_50, %c2], %129 {strides = array<i32>} : memref<8x8xf32, #tpu.memory_space<vmem>>, vector<8x1xf32>,
    %131 = vector.extract_strided_slice %19 {offsets = [0, 3], sizes = [32, 1], strides = [1, 1]} : vector<32x8xf32> to vector<32x1xf32>
    %132 = vector.broadcast %122 : vector<8x1xf32> to vector<8x8xf32>
    %133 = arith.mulf %132, %26 : vector<8x8xf32>
    %cst_51 = arith.constant dense<0.000000e+00> : vector<8xf32>
    %134 = vector.multi_reduction <add>, %133, %cst_51 [0] : vector<8x8xf32> to vector<8xf32>
    %135 = vector.shape_cast %134 : vector<8xf32> to vector<1x8xf32>
    %136 = vector.broadcast %135 : vector<1x8xf32> to vector<32x8xf32>
    %137 = arith.mulf %20, %136 : vector<32x8xf32>
    %cst_52 = arith.constant dense<0.000000e+00> : vector<32xf32>
    %138 = vector.multi_reduction <add>, %137, %cst_52 [1] : vector<32x8xf32> to vector<32xf32>
    %139 = vector.shape_cast %138 : vector<32xf32> to vector<32x1xf32>
    %140 = arith.addf %131, %139 : vector<32x1xf32>
    %141 = math.tanh %140 : vector<32x1xf32>
    %142 = vector.extract_strided_slice %141 {offsets = [0, 0], sizes = [8, 1], strides = [1, 1]} : vector<32x1xf32> to vector<8x1xf32>
    %cst_53 = arith.constant 5.000000e-01 : f32
    %143 = vector.broadcast %cst_53 : f32 to vector<8x1xf32>
    %144 = arith.mulf %143, %142 : vector<8x1xf32>
    %cst_54 = arith.constant 5.000000e-01 : f32
    %145 = vector.broadcast %cst_54 : f32 to vector<8x1xf32>
    %146 = arith.addf %144, %145 : vector<8x1xf32>
    %147 = vector.extract_strided_slice %141 {offsets = [8, 0], sizes = [8, 1], strides = [1, 1]} : vector<32x1xf32> to vector<8x1xf32>
    %cst_55 = arith.constant 5.000000e-01 : f32
    %148 = vector.broadcast %cst_55 : f32 to vector<8x1xf32>
    %149 = arith.mulf %148, %147 : vector<8x1xf32>
    %cst_56 = arith.constant 5.000000e-01 : f32
    %150 = vector.broadcast %cst_56 : f32 to vector<8x1xf32>
    %151 = arith.addf %149, %150 : vector<8x1xf32>
    %152 = vector.extract_strided_slice %141 {offsets = [16, 0], sizes = [8, 1], strides = [1, 1]} : vector<32x1xf32> to vector<8x1xf32>
    %153 = vector.extract_strided_slice %141 {offsets = [24, 0], sizes = [8, 1], strides = [1, 1]} : vector<32x1xf32> to vector<8x1xf32>
    %cst_57 = arith.constant 5.000000e-01 : f32
    %154 = vector.broadcast %cst_57 : f32 to vector<8x1xf32>
    %155 = arith.mulf %154, %153 : vector<8x1xf32>
    %cst_58 = arith.constant 5.000000e-01 : f32
    %156 = vector.broadcast %cst_58 : f32 to vector<8x1xf32>
    %157 = arith.addf %155, %156 : vector<8x1xf32>
    %158 = arith.mulf %151, %120 : vector<8x1xf32>
    %159 = arith.mulf %146, %152 : vector<8x1xf32>
    %160 = arith.addf %158, %159 : vector<8x1xf32>
    %161 = math.tanh %160 : vector<8x1xf32>
    %162 = arith.mulf %157, %161 : vector<8x1xf32>
    %163 = vector.extract_strided_slice %21 {offsets = [0, 3], sizes = [1, 1], strides = [1, 1]} : vector<1x8xf32> to vector<1x1xf32>
    %cst_59 = arith.constant 0.000000e+00 : f32
    %164 = vector.broadcast %cst_59 : f32 to vector<1x1xf32>
    %165 = arith.cmpf one, %163, %164 : vector<1x1xf32>
    %cst_60 = arith.constant 0xFF800000 : f32
    %166 = vector.shape_cast %165 : vector<1x1xi1> to vector<1x1xi1>
    %167 = vector.broadcast %166 : vector<1x1xi1> to vector<8x1xi1>
    %168 = vector.broadcast %cst_60 : f32 to vector<8x1xf32>
    %169 = arith.select %167, %162, %168 : vector<8x1xi1>, vector<8x1xf32>
    %c0_61 = arith.constant 0 : index
    %c3 = arith.constant 3 : index
    %170 = vector.load %arg9[%c0_61, %c3] : memref<8x8xf32, #tpu.memory_space<vmem>>, vector<8x1xf32>
    tpu.vector_store %arg9[%c0_61, %c3], %169 {strides = array<i32>} : memref<8x8xf32, #tpu.memory_space<vmem>>, vector<8x1xf32>,
    %171 = vector.extract_strided_slice %19 {offsets = [0, 4], sizes = [32, 1], strides = [1, 1]} : vector<32x8xf32> to vector<32x1xf32>
    %172 = vector.broadcast %162 : vector<8x1xf32> to vector<8x8xf32>
    %173 = arith.mulf %172, %26 : vector<8x8xf32>
    %cst_62 = arith.constant dense<0.000000e+00> : vector<8xf32>
    %174 = vector.multi_reduction <add>, %173, %cst_62 [0] : vector<8x8xf32> to vector<8xf32>
    %175 = vector.shape_cast %174 : vector<8xf32> to vector<1x8xf32>
    %176 = vector.broadcast %175 : vector<1x8xf32> to vector<32x8xf32>
    %177 = arith.mulf %20, %176 : vector<32x8xf32>
    %cst_63 = arith.constant dense<0.000000e+00> : vector<32xf32>
    %178 = vector.multi_reduction <add>, %177, %cst_63 [1] : vector<32x8xf32> to vector<32xf32>
    %179 = vector.shape_cast %178 : vector<32xf32> to vector<32x1xf32>
    %180 = arith.addf %171, %179 : vector<32x1xf32>
    %181 = math.tanh %180 : vector<32x1xf32>
    %182 = vector.extract_strided_slice %181 {offsets = [0, 0], sizes = [8, 1], strides = [1, 1]} : vector<32x1xf32> to vector<8x1xf32>
    %cst_64 = arith.constant 5.000000e-01 : f32
    %183 = vector.broadcast %cst_64 : f32 to vector<8x1xf32>
    %184 = arith.mulf %183, %182 : vector<8x1xf32>
    %cst_65 = arith.constant 5.000000e-01 : f32
    %185 = vector.broadcast %cst_65 : f32 to vector<8x1xf32>
    %186 = arith.addf %184, %185 : vector<8x1xf32>
    %187 = vector.extract_strided_slice %181 {offsets = [8, 0], sizes = [8, 1], strides = [1, 1]} : vector<32x1xf32> to vector<8x1xf32>
    %cst_66 = arith.constant 5.000000e-01 : f32
    %188 = vector.broadcast %cst_66 : f32 to vector<8x1xf32>
    %189 = arith.mulf %188, %187 : vector<8x1xf32>
    %cst_67 = arith.constant 5.000000e-01 : f32
    %190 = vector.broadcast %cst_67 : f32 to vector<8x1xf32>
    %191 = arith.addf %189, %190 : vector<8x1xf32>
    %192 = vector.extract_strided_slice %181 {offsets = [16, 0], sizes = [8, 1], strides = [1, 1]} : vector<32x1xf32> to vector<8x1xf32>
    %193 = vector.extract_strided_slice %181 {offsets = [24, 0], sizes = [8, 1], strides = [1, 1]} : vector<32x1xf32> to vector<8x1xf32>
    %cst_68 = arith.constant 5.000000e-01 : f32
    %194 = vector.broadcast %cst_68 : f32 to vector<8x1xf32>
    %195 = arith.mulf %194, %193 : vector<8x1xf32>
    %cst_69 = arith.constant 5.000000e-01 : f32
    %196 = vector.broadcast %cst_69 : f32 to vector<8x1xf32>
    %197 = arith.addf %195, %196 : vector<8x1xf32>
    %198 = arith.mulf %191, %160 : vector<8x1xf32>
    %199 = arith.mulf %186, %192 : vector<8x1xf32>
    %200 = arith.addf %198, %199 : vector<8x1xf32>
    %201 = math.tanh %200 : vector<8x1xf32>
    %202 = arith.mulf %197, %201 : vector<8x1xf32>
    %203 = vector.extract_strided_slice %21 {offsets = [0, 4], sizes = [1, 1], strides = [1, 1]} : vector<1x8xf32> to vector<1x1xf32>
    %cst_70 = arith.constant 0.000000e+00 : f32
    %204 = vector.broadcast %cst_70 : f32 to vector<1x1xf32>
    %205 = arith.cmpf one, %203, %204 : vector<1x1xf32>
    %cst_71 = arith.constant 0xFF800000 : f32
    %206 = vector.shape_cast %205 : vector<1x1xi1> to vector<1x1xi1>
    %207 = vector.broadcast %206 : vector<1x1xi1> to vector<8x1xi1>
    %208 = vector.broadcast %cst_71 : f32 to vector<8x1xf32>
    %209 = arith.select %207, %202, %208 : vector<8x1xi1>, vector<8x1xf32>
    %c0_72 = arith.constant 0 : index
    %c4 = arith.constant 4 : index
    %210 = vector.load %arg9[%c0_72, %c4] : memref<8x8xf32, #tpu.memory_space<vmem>>, vector<8x1xf32>
    tpu.vector_store %arg9[%c0_72, %c4], %209 {strides = array<i32>} : memref<8x8xf32, #tpu.memory_space<vmem>>, vector<8x1xf32>,
    %211 = vector.extract_strided_slice %19 {offsets = [0, 5], sizes = [32, 1], strides = [1, 1]} : vector<32x8xf32> to vector<32x1xf32>
    %212 = vector.broadcast %202 : vector<8x1xf32> to vector<8x8xf32>
    %213 = arith.mulf %212, %26 : vector<8x8xf32>
    %cst_73 = arith.constant dense<0.000000e+00> : vector<8xf32>
    %214 = vector.multi_reduction <add>, %213, %cst_73 [0] : vector<8x8xf32> to vector<8xf32>
    %215 = vector.shape_cast %214 : vector<8xf32> to vector<1x8xf32>
    %216 = vector.broadcast %215 : vector<1x8xf32> to vector<32x8xf32>
    %217 = arith.mulf %20, %216 : vector<32x8xf32>
    %cst_74 = arith.constant dense<0.000000e+00> : vector<32xf32>
    %218 = vector.multi_reduction <add>, %217, %cst_74 [1] : vector<32x8xf32> to vector<32xf32>
    %219 = vector.shape_cast %218 : vector<32xf32> to vector<32x1xf32>
    %220 = arith.addf %211, %219 : vector<32x1xf32>
    %221 = math.tanh %220 : vector<32x1xf32>
    %222 = vector.extract_strided_slice %221 {offsets = [0, 0], sizes = [8, 1], strides = [1, 1]} : vector<32x1xf32> to vector<8x1xf32>
    %cst_75 = arith.constant 5.000000e-01 : f32
    %223 = vector.broadcast %cst_75 : f32 to vector<8x1xf32>
    %224 = arith.mulf %223, %222 : vector<8x1xf32>
    %cst_76 = arith.constant 5.000000e-01 : f32
    %225 = vector.broadcast %cst_76 : f32 to vector<8x1xf32>
    %226 = arith.addf %224, %225 : vector<8x1xf32>
    %227 = vector.extract_strided_slice %221 {offsets = [8, 0], sizes = [8, 1], strides = [1, 1]} : vector<32x1xf32> to vector<8x1xf32>
    %cst_77 = arith.constant 5.000000e-01 : f32
    %228 = vector.broadcast %cst_77 : f32 to vector<8x1xf32>
    %229 = arith.mulf %228, %227 : vector<8x1xf32>
    %cst_78 = arith.constant 5.000000e-01 : f32
    %230 = vector.broadcast %cst_78 : f32 to vector<8x1xf32>
    %231 = arith.addf %229, %230 : vector<8x1xf32>
    %232 = vector.extract_strided_slice %221 {offsets = [16, 0], sizes = [8, 1], strides = [1, 1]} : vector<32x1xf32> to vector<8x1xf32>
    %233 = vector.extract_strided_slice %221 {offsets = [24, 0], sizes = [8, 1], strides = [1, 1]} : vector<32x1xf32> to vector<8x1xf32>
    %cst_79 = arith.constant 5.000000e-01 : f32
    %234 = vector.broadcast %cst_79 : f32 to vector<8x1xf32>
    %235 = arith.mulf %234, %233 : vector<8x1xf32>
    %cst_80 = arith.constant 5.000000e-01 : f32
    %236 = vector.broadcast %cst_80 : f32 to vector<8x1xf32>
    %237 = arith.addf %235, %236 : vector<8x1xf32>
    %238 = arith.mulf %231, %200 : vector<8x1xf32>
    %239 = arith.mulf %226, %232 : vector<8x1xf32>
    %240 = arith.addf %238, %239 : vector<8x1xf32>
    %241 = math.tanh %240 : vector<8x1xf32>
    %242 = arith.mulf %237, %241 : vector<8x1xf32>
    %243 = vector.extract_strided_slice %21 {offsets = [0, 5], sizes = [1, 1], strides = [1, 1]} : vector<1x8xf32> to vector<1x1xf32>
    %cst_81 = arith.constant 0.000000e+00 : f32
    %244 = vector.broadcast %cst_81 : f32 to vector<1x1xf32>
    %245 = arith.cmpf one, %243, %244 : vector<1x1xf32>
    %cst_82 = arith.constant 0xFF800000 : f32
    %246 = vector.shape_cast %245 : vector<1x1xi1> to vector<1x1xi1>
    %247 = vector.broadcast %246 : vector<1x1xi1> to vector<8x1xi1>
    %248 = vector.broadcast %cst_82 : f32 to vector<8x1xf32>
    %249 = arith.select %247, %242, %248 : vector<8x1xi1>, vector<8x1xf32>
    %c0_83 = arith.constant 0 : index
    %c5 = arith.constant 5 : index
    %250 = vector.load %arg9[%c0_83, %c5] : memref<8x8xf32, #tpu.memory_space<vmem>>, vector<8x1xf32>
    tpu.vector_store %arg9[%c0_83, %c5], %249 {strides = array<i32>} : memref<8x8xf32, #tpu.memory_space<vmem>>, vector<8x1xf32>,
    %251 = vector.extract_strided_slice %19 {offsets = [0, 6], sizes = [32, 1], strides = [1, 1]} : vector<32x8xf32> to vector<32x1xf32>
    %252 = vector.broadcast %242 : vector<8x1xf32> to vector<8x8xf32>
    %253 = arith.mulf %252, %26 : vector<8x8xf32>
    %cst_84 = arith.constant dense<0.000000e+00> : vector<8xf32>
    %254 = vector.multi_reduction <add>, %253, %cst_84 [0] : vector<8x8xf32> to vector<8xf32>
    %255 = vector.shape_cast %254 : vector<8xf32> to vector<1x8xf32>
    %256 = vector.broadcast %255 : vector<1x8xf32> to vector<32x8xf32>
    %257 = arith.mulf %20, %256 : vector<32x8xf32>
    %cst_85 = arith.constant dense<0.000000e+00> : vector<32xf32>
    %258 = vector.multi_reduction <add>, %257, %cst_85 [1] : vector<32x8xf32> to vector<32xf32>
    %259 = vector.shape_cast %258 : vector<32xf32> to vector<32x1xf32>
    %260 = arith.addf %251, %259 : vector<32x1xf32>
    %261 = math.tanh %260 : vector<32x1xf32>
    %262 = vector.extract_strided_slice %261 {offsets = [0, 0], sizes = [8, 1], strides = [1, 1]} : vector<32x1xf32> to vector<8x1xf32>
    %cst_86 = arith.constant 5.000000e-01 : f32
    %263 = vector.broadcast %cst_86 : f32 to vector<8x1xf32>
    %264 = arith.mulf %263, %262 : vector<8x1xf32>
    %cst_87 = arith.constant 5.000000e-01 : f32
    %265 = vector.broadcast %cst_87 : f32 to vector<8x1xf32>
    %266 = arith.addf %264, %265 : vector<8x1xf32>
    %267 = vector.extract_strided_slice %261 {offsets = [8, 0], sizes = [8, 1], strides = [1, 1]} : vector<32x1xf32> to vector<8x1xf32>
    %cst_88 = arith.constant 5.000000e-01 : f32
    %268 = vector.broadcast %cst_88 : f32 to vector<8x1xf32>
    %269 = arith.mulf %268, %267 : vector<8x1xf32>
    %cst_89 = arith.constant 5.000000e-01 : f32
    %270 = vector.broadcast %cst_89 : f32 to vector<8x1xf32>
    %271 = arith.addf %269, %270 : vector<8x1xf32>
    %272 = vector.extract_strided_slice %261 {offsets = [16, 0], sizes = [8, 1], strides = [1, 1]} : vector<32x1xf32> to vector<8x1xf32>
    %273 = vector.extract_strided_slice %261 {offsets = [24, 0], sizes = [8, 1], strides = [1, 1]} : vector<32x1xf32> to vector<8x1xf32>
    %cst_90 = arith.constant 5.000000e-01 : f32
    %274 = vector.broadcast %cst_90 : f32 to vector<8x1xf32>
    %275 = arith.mulf %274, %273 : vector<8x1xf32>
    %cst_91 = arith.constant 5.000000e-01 : f32
    %276 = vector.broadcast %cst_91 : f32 to vector<8x1xf32>
    %277 = arith.addf %275, %276 : vector<8x1xf32>
    %278 = arith.mulf %271, %240 : vector<8x1xf32>
    %279 = arith.mulf %266, %272 : vector<8x1xf32>
    %280 = arith.addf %278, %279 : vector<8x1xf32>
    %281 = math.tanh %280 : vector<8x1xf32>
    %282 = arith.mulf %277, %281 : vector<8x1xf32>
    %283 = vector.extract_strided_slice %21 {offsets = [0, 6], sizes = [1, 1], strides = [1, 1]} : vector<1x8xf32> to vector<1x1xf32>
    %cst_92 = arith.constant 0.000000e+00 : f32
    %284 = vector.broadcast %cst_92 : f32 to vector<1x1xf32>
    %285 = arith.cmpf one, %283, %284 : vector<1x1xf32>
    %cst_93 = arith.constant 0xFF800000 : f32
    %286 = vector.shape_cast %285 : vector<1x1xi1> to vector<1x1xi1>
    %287 = vector.broadcast %286 : vector<1x1xi1> to vector<8x1xi1>
    %288 = vector.broadcast %cst_93 : f32 to vector<8x1xf32>
    %289 = arith.select %287, %282, %288 : vector<8x1xi1>, vector<8x1xf32>
    %c0_94 = arith.constant 0 : index
    %c6 = arith.constant 6 : index
    %290 = vector.load %arg9[%c0_94, %c6] : memref<8x8xf32, #tpu.memory_space<vmem>>, vector<8x1xf32>
    tpu.vector_store %arg9[%c0_94, %c6], %289 {strides = array<i32>} : memref<8x8xf32, #tpu.memory_space<vmem>>, vector<8x1xf32>,
    %291 = vector.extract_strided_slice %19 {offsets = [0, 7], sizes = [32, 1], strides = [1, 1]} : vector<32x8xf32> to vector<32x1xf32>
    %292 = vector.broadcast %282 : vector<8x1xf32> to vector<8x8xf32>
    %293 = arith.mulf %292, %26 : vector<8x8xf32>
    %cst_95 = arith.constant dense<0.000000e+00> : vector<8xf32>
    %294 = vector.multi_reduction <add>, %293, %cst_95 [0] : vector<8x8xf32> to vector<8xf32>
    %295 = vector.shape_cast %294 : vector<8xf32> to vector<1x8xf32>
    %296 = vector.broadcast %295 : vector<1x8xf32> to vector<32x8xf32>
    %297 = arith.mulf %20, %296 : vector<32x8xf32>
    %cst_96 = arith.constant dense<0.000000e+00> : vector<32xf32>
    %298 = vector.multi_reduction <add>, %297, %cst_96 [1] : vector<32x8xf32> to vector<32xf32>
    %299 = vector.shape_cast %298 : vector<32xf32> to vector<32x1xf32>
    %300 = arith.addf %291, %299 : vector<32x1xf32>
    %301 = math.tanh %300 : vector<32x1xf32>
    %302 = vector.extract_strided_slice %301 {offsets = [0, 0], sizes = [8, 1], strides = [1, 1]} : vector<32x1xf32> to vector<8x1xf32>
    %cst_97 = arith.constant 5.000000e-01 : f32
    %303 = vector.broadcast %cst_97 : f32 to vector<8x1xf32>
    %304 = arith.mulf %303, %302 : vector<8x1xf32>
    %cst_98 = arith.constant 5.000000e-01 : f32
    %305 = vector.broadcast %cst_98 : f32 to vector<8x1xf32>
    %306 = arith.addf %304, %305 : vector<8x1xf32>
    %307 = vector.extract_strided_slice %301 {offsets = [8, 0], sizes = [8, 1], strides = [1, 1]} : vector<32x1xf32> to vector<8x1xf32>
    %cst_99 = arith.constant 5.000000e-01 : f32
    %308 = vector.broadcast %cst_99 : f32 to vector<8x1xf32>
    %309 = arith.mulf %308, %307 : vector<8x1xf32>
    %cst_100 = arith.constant 5.000000e-01 : f32
    %310 = vector.broadcast %cst_100 : f32 to vector<8x1xf32>
    %311 = arith.addf %309, %310 : vector<8x1xf32>
    %312 = vector.extract_strided_slice %301 {offsets = [16, 0], sizes = [8, 1], strides = [1, 1]} : vector<32x1xf32> to vector<8x1xf32>
    %313 = vector.extract_strided_slice %301 {offsets = [24, 0], sizes = [8, 1], strides = [1, 1]} : vector<32x1xf32> to vector<8x1xf32>
    %cst_101 = arith.constant 5.000000e-01 : f32
    %314 = vector.broadcast %cst_101 : f32 to vector<8x1xf32>
    %315 = arith.mulf %314, %313 : vector<8x1xf32>
    %cst_102 = arith.constant 5.000000e-01 : f32
    %316 = vector.broadcast %cst_102 : f32 to vector<8x1xf32>
    %317 = arith.addf %315, %316 : vector<8x1xf32>
    %318 = arith.mulf %311, %280 : vector<8x1xf32>
    %319 = arith.mulf %306, %312 : vector<8x1xf32>
    %320 = arith.addf %318, %319 : vector<8x1xf32>
    %321 = math.tanh %320 : vector<8x1xf32>
    %322 = arith.mulf %317, %321 : vector<8x1xf32>
    %323 = vector.extract_strided_slice %21 {offsets = [0, 7], sizes = [1, 1], strides = [1, 1]} : vector<1x8xf32> to vector<1x1xf32>
    %cst_103 = arith.constant 0.000000e+00 : f32
    %324 = vector.broadcast %cst_103 : f32 to vector<1x1xf32>
    %325 = arith.cmpf one, %323, %324 : vector<1x1xf32>
    %cst_104 = arith.constant 0xFF800000 : f32
    %326 = vector.shape_cast %325 : vector<1x1xi1> to vector<1x1xi1>
    %327 = vector.broadcast %326 : vector<1x1xi1> to vector<8x1xi1>
    %328 = vector.broadcast %cst_104 : f32 to vector<8x1xf32>
    %329 = arith.select %327, %322, %328 : vector<8x1xi1>, vector<8x1xf32>
    %c0_105 = arith.constant 0 : index
    %c7 = arith.constant 7 : index
    %330 = vector.load %arg9[%c0_105, %c7] : memref<8x8xf32, #tpu.memory_space<vmem>>, vector<8x1xf32>
    tpu.vector_store %arg9[%c0_105, %c7], %329 {strides = array<i32>} : memref<8x8xf32, #tpu.memory_space<vmem>>, vector<8x1xf32>,
    %c0_106 = arith.constant 0 : index
    %c0_107 = arith.constant 0 : index
    %331 = vector.load %arg10[%c0_106, %c0_107] : memref<8x1xf32, #tpu.memory_space<vmem>>, vector<8x1xf32>
    tpu.vector_store %arg10[%c0_106, %c0_107], %322 {strides = array<i32>} : memref<8x1xf32, #tpu.memory_space<vmem>>, vector<8x1xf32>,
    %c0_108 = arith.constant 0 : index
    %c0_109 = arith.constant 0 : index
    %332 = vector.load %arg11[%c0_108, %c0_109] : memref<8x1xf32, #tpu.memory_space<vmem>>, vector<8x1xf32>
    tpu.vector_store %arg11[%c0_108, %c0_109], %320 {strides = array<i32>} : memref<8x1xf32, #tpu.memory_space<vmem>>, vector<8x1xf32>,
    return
  }
}

</mosaic_0001>

<bundles_post_ra>
// kernel: qnet_lstm_forward.1
= control target key start
LH: loop header
LB: loop body
LE: loop exit
PB: predicated region body
PF: predicated region fallthrough
CT: control target
= control target key end

     0   :  { %vm93_vm0 = vcmask 130048   ;;  %v555_v0 = vlaneseq  ;;  %v1248_v4 = vmov 0   ;;  %vm287_vm2 = vcmask 523264   ;;  %s1257_s12 = smov 121   ;;  %s1673_s0 = inlined_call_operand.vmem [shape: f32[16,8], index: 0, kind: input, shape index: {}]   ;;  %s1674_s1 = inlined_call_operand.vmem [shape: f32[64,16], index: 1, kind: input, shape index: {}]   ;;  %s1675_s2 = inlined_call_operand.vmem [shape: f32[64,1], index: 2, kind: input, shape index: {}]   ;;  %s1676_s4 = inlined_call_operand.vmem [shape: f32[64,1], index: 4, kind: input, shape index: {}]   ;;  %s1677_s7 = inlined_call_operand.vmem [shape: f32[32,1], index: 7, kind: input, shape index: {}]   ;;  %s1678_s3 = inlined_call_operand.vmem [shape: f32[64,64], index: 3, kind: input, shape index: {}]   ;;  %s1679_s5 = inlined_call_operand.vmem [shape: f32[32,64], index: 5, kind: input, shape index: {}]   ;;  %s1680_s8 = inlined_call_operand.vmem [shape: f32[1,8], index: 8, kind: input, shape index: {}]   ;;  %s1681_s9 = inlined_call_operand.vmem [shape: f32[8,8], index: 9, kind: output, shape index: {0}]   ;;  %s1682_s6 = inlined_call_operand.vmem [shape: f32[32,8], index: 6, kind: input, shape index: {}]   ;;  %s1683_s11 = inlined_call_operand.vmem [shape: f32[8,1], index: 11, kind: output, shape index: {2}]   ;;  %s1684_s10 = inlined_call_operand.vmem [shape: f32[8,1], index: 10, kind: output, shape index: {1}]  }
   0x1   :  { %v43_v1 = vld [vmem:[%s1673_s0] sm:$0xff]  ;;  %v44_v2 = vld [vmem:[%s1673_s0 + $0x8] sm:$0xff]  ;;  %1161 = vset.pattern.permute.xlu0 %v1248_v4  ;;  %1162 = vset.pattern.permute.xlu1 %v1248_v4  ;;  %v47_v10 = vld [vmem:[%s1675_s2 + $0x10] sm:$0xff]  ;;  %vm580_vm5 = vcmask 7168   ;;  %vm588_vm6 = vcmask 64512   ;;  %vm636_vm7 = vcmask 15368  }
   0x2   :  { %v35_v3 = vld [vmem:[%s1674_s1] sm:$0xff]  ;;  %v1115_v5 = vpack.c.bf16 %v44_v2, %v43_v1  ;;  %v1330_v6 = vshrl.u32 %v555_v0, 7  ;;  %v1332_v7 = vand.u32 127, %v555_v0  ;;  %v36_v9 = vld [vmem:[%s1674_s1 + $0x8] sm:$0xff]  ;;  %v37_v11 = vld [vmem:[%s1674_s1 + $0x10] sm:$0xff]  ;;  %65 = vperm.xlu1 %1162, %v47_v10   ;;  %vm691_vm8 = vcmask 23568  }
   0x3   :  { %1053 = vmatprep.mubr.msk.f32.mxu0 %vm93_vm0, %v35_v3  ;;  %v45_v8 = vld [vmem:[%s1675_s2] sm:$0xff]  ;;  %v46_v12 = vld [vmem:[%s1675_s2 + $0x8] sm:$0xff]  ;;  %v48_v13 = vld [vmem:[%s1675_s2 + $0x18] sm:$0xff]  ;;  %vm746_vm9 = vcmask 31768   ;;  %vm801_vm10 = vcmask 39968   ;;  %vm856_vm11 = vcmask 48168  }
   0x4   :  { %1116 = vmatprep.subr.bf16.mxu0 %v1115_v5  ;;  %vm559_vm1 = vcmp.eq.s32.totalorder %v1330_v6, %v1332_v7  ;;  %55 = vperm.xlu0 %1161, %v45_v8   ;;  %v38_v14 = vld [vmem:[%s1674_s1 + $0x18] sm:$0xff]  ;;  %v39_v15 = vld [vmem:[%s1674_s1 + $0x20] sm:$0xff]  ;;  %v50_v17 = vld [vmem:[%s1675_s2 + $0x28] sm:$0xff]  ;;  %vm911_vm12 = vcmask 56368   ;;  %vm966_vm13 = vcmask 64568  }
   0x5   :  { %1118 = vmatpush3.bf16.msra.mxu0 %v1115_v5  ;;  %v49_v16 = vld [vmem:[%s1675_s2 + $0x20] sm:$0xff]  ;;  %v40_v18 = vld [vmem:[%s1674_s1 + $0x28] sm:$0xff]  ;;  %v41_v19 = vld [vmem:[%s1674_s1 + $0x30] sm:$0xff] }
   0x6   :  { %70 = vperm.xlu1 %1162, %v48_v13   ;;  %v51_v20 = vld [vmem:[%s1675_s2 + $0x30] sm:$0xff]  ;;  %v52_v21 = vld [vmem:[%s1675_s2 + $0x38] sm:$0xff]  ;;  %v239_v23 = vld [vmem:[%s1676_s4] sm:$0xff] }
   0x7   :  { %v42_v22 = vld [vmem:[%s1674_s1 + $0x38] sm:$0xff]  ;;  %v240_v24 = vld [vmem:[%s1676_s4 + $0x8] sm:$0xff]  ;;  %v241_v25 = vld [vmem:[%s1676_s4 + $0x10] sm:$0xff] }
   0x8   :  { %1054 = vmatmul.mubr.msk.f32.vlgmr.msra.gmra.mrb[0].mxu0 %vm93_vm0, %v36_v9  ;;  %60 = vperm.xlu0 %1161, %v46_v12   ;;  %v242_v26 = vld [vmem:[%s1676_s4 + $0x18] sm:$0xff]  ;;  %v243_v27 = vld [vmem:[%s1676_s4 + $0x20] sm:$0xff]  ;;  %v244_v28 = vld [vmem:[%s1676_s4 + $0x28] sm:$0xff] }
   0x9   :  { %1056 = vmatprep.mubr.msk.f32.mxu0 %vm93_vm0, %v37_v11  ;;  %v245_v29 = vld [vmem:[%s1676_s4 + $0x30] sm:$0xff]  ;;  %v246_v30 = vld [vmem:[%s1676_s4 + $0x38] sm:$0xff]  ;;  %v429_v31 = vld [vmem:[%s1677_s7] sm:$0xff] }
   0xa   :  { %80 = vperm.xlu1 %1162, %v50_v17   ;;  %v431_v32 = vld [vmem:[%s1677_s7 + $0x10] sm:$0xff]  ;;  %v432_v33 = vld [vmem:[%s1677_s7 + $0x18] sm:$0xff]  ;;  %v231_v34 = vld [vmem:[%s1678_s3] sm:$0xff] }
   0xb   :  { %1081 = vmatprep.mubr.msk.f32.mxu1 %vm287_vm2, %v231_v34  ;;  %v232_v10 = vld [vmem:[%s1678_s3 + $0x8] sm:$0xff]  ;;  %v233_v11 = vld [vmem:[%s1678_s3 + $0x10] sm:$0xff]  ;;  %v234_v12 = vld [vmem:[%s1678_s3 + $0x18] sm:$0xff] }
   0xc   :  { %1057 = vmatmul.mubr.msk.f32.gmra.mrb[2].mxu0 %vm93_vm0, %v38_v14  ;;  %75 = vperm.xlu0 %1161, %v49_v16   ;;  %v235_v13 = vld [vmem:[%s1678_s3 + $0x20] sm:$0xff]  ;;  %v236_v14 = vld [vmem:[%s1678_s3 + $0x28] sm:$0xff]  ;;  %v238_v16 = vld [vmem:[%s1678_s3 + $0x38] sm:$0xff] }
   0xd   :  { %1059 = vmatprep.mubr.msk.f32.mxu0 %vm93_vm0, %v39_v15  ;;  %v237_v15 = vld [vmem:[%s1678_s3 + $0x30] sm:$0xff]  ;;  %v425_v17 = vld [vmem:[%s1679_s5] sm:$0xff] }
   0xe   :  { %90 = vperm.xlu1 %1162, %v52_v21  }
  0x10   :  { %1060 = vmatmul.mubr.msk.f32.gmra.mrb[4].mxu0 %vm93_vm0, %v40_v18  ;;  %85 = vperm.xlu0 %1161, %v51_v20  }
  0x11   :  { %1062 = vmatprep.mubr.msk.f32.mxu0 %vm93_vm0, %v41_v19 }
  0x12   :  { %254 = vperm.xlu1 %1162, %v240_v24  }
  0x14   :  { %1063 = vmatmul.mubr.msk.f32.gmra.mrb[6].mxu0 %vm93_vm0, %v42_v22  ;;  %249 = vperm.xlu0 %1161, %v239_v23  }
  0x15   :  { %1109 = vmatprep.mubr.msk.f32.mxu0 %vm287_vm2, %v425_v17 }
  0x16   :  { %264 = vperm.xlu1 %1162, %v242_v26  }
  0x18   :  { %259 = vperm.xlu0 %1161, %v241_v25  }
  0x1a   :  { %274 = vperm.xlu1 %1162, %v244_v28  }
  0x1c   :  { %269 = vperm.xlu0 %1161, %v243_v27  }
  0x1e   :  { %284 = vperm.xlu1 %1162, %v246_v30  }
  0x20   :  { %279 = vperm.xlu0 %1161, %v245_v29  }
  0x22   :  { %445 = vperm.xlu1 %1162, %v431_v32  }
  0x24   :  { %435 = vperm.xlu0 %1161, %v429_v31  }
  0x28   :  { %450 = vperm.xlu0 %1161, %v432_v33  }
  0x81   :  { %v66_v36 = vpop.permute.xlu1 %65 }
  0x83   :  { %v56_v35 = vpop.permute.xlu0 %55 }
  0x85   :  { %v71_v38 = vpop.permute.xlu1 %70 }
  0x87   :  { %v61_v37 = vpop.permute.xlu0 %60 }
  0x89   :  { %v81_v48 = vpop.permute.xlu1 %80 }
  0x8b   :  { %v76_v51 = vpop.permute.xlu0 %75 }
  0x8d   :  { %v91_v60 = vpop.permute.xlu1 %90 }
  0x8f   :  { %v86_v63 = vpop.permute.xlu0 %85 }
  0x91   :  { %v255_v18 = vpop.permute.xlu1 %254 }
  0x93   :  { %v250_v19 = vpop.permute.xlu0 %249 }
  0x95   :  { %v265_v20 = vpop.permute.xlu1 %264 }
  0x97   :  { %v260_v22 = vpop.permute.xlu0 %259 }
  0x99   :  { %v275_v31 = vpop.permute.xlu1 %274 }
  0x9b   :  { %v270_v34 = vpop.permute.xlu0 %269 }
  0xdb   :  { %v1055_v39 = vpop.f32.mrb[0].mxu0 }
  0xdc   :  { %v190_v40 = vadd.f32 %v1055_v39, %v61_v37  ;;  %v184_v41 = vpop.f32.mrb[1].mxu0 }
  0xdd   :  { %v185_v42 = vadd.f32 %v184_v41, %v56_v35 }
  0xde   :  { %v224_v43 = vmax.f32 %v190_v40, 0.0 }
  0xdf   :  { %v223_v44 = vmax.f32 %v185_v42, 0.0  ;;  %v1058_v45 = vpop.f32.mrb[2].mxu0 }
  0xe0   :  { %v200_v46 = vadd.f32 %v1058_v45, %v71_v38  ;;  %v194_v47 = vpop.f32.mrb[3].mxu0 }
  0xe1   :  { %v195_v49 = vadd.f32 %v194_v47, %v66_v36  ;;  %v1119_v50 = vpack.c.bf16 %v224_v43, %v223_v44  ;;  %v285_v43 = vpop.permute.xlu1 %284 }
  0xe2   :  { %v226_v52 = vmax.f32 %v200_v46, 0.0  ;;  %v280_v46 = vpop.permute.xlu0 %279 }
  0xe3   :  { %v225_v53 = vmax.f32 %v195_v49, 0.0  ;;  %v1061_v54 = vpop.f32.mrb[4].mxu0  ;;  %1120 = vmatprep.subr.bf16.mxu1 %v1119_v50 }
  0xe4   :  { %v210_v55 = vadd.f32 %v1061_v54, %v81_v48  ;;  %v204_v56 = vpop.f32.mrb[5].mxu0  ;;  %1122 = vmatpush3.bf16.msra.mxu1 %v1119_v50  ;;  %v426_v54 = vld [vmem:[%s1679_s5 + $0x8] sm:$0xff] }
  0xe5   :  { %v1123_v57 = vpack.c.bf16 %v226_v52, %v225_v53  ;;  %v205_v58 = vadd.f32 %v204_v56, %v76_v51  ;;  %v428_v56 = vld [vmem:[%s1679_s5 + $0x18] sm:$0xff] }
  0xe6   :  { %v228_v59 = vmax.f32 %v210_v55, 0.0  ;;  %v427_v55 = vld [vmem:[%s1679_s5 + $0x10] sm:$0xff] }
  0xe7   :  { %v227_v61 = vmax.f32 %v205_v58, 0.0  ;;  %v1064_v62 = vpop.f32.mrb[6].mxu0  ;;  %1124 = vmatprep.subr.bf16.mxu1 %v1123_v57  ;;  %v436_v58 = vpop.permute.xlu0 %435 }
  0xe8   :  { %v220_v0 = vadd.f32 %v1064_v62, %v91_v60  ;;  %v214_v1 = vpop.f32.mrb[7].mxu0  ;;  %1126 = vmatpush3.bf16.msra.mxu1 %v1123_v57  ;;  %v446_v62 = vpop.permute.xlu1 %445 }
  0xe9   :  { %v1127_v2 = vpack.c.bf16 %v228_v59, %v227_v61  ;;  %v215_v3 = vadd.f32 %v214_v1, %v86_v63 }
  0xea   :  { %v230_v5 = vmax.f32 %v220_v0, 0.0 }
  0xeb   :  { %v229_v8 = vmax.f32 %v215_v3, 0.0  ;;  %1128 = vmatprep.subr.bf16.mxu1 %v1127_v2  ;;  %v451_v1 = vpop.permute.xlu0 %450 }
  0xec   :  { %1130 = vmatpush3.bf16.msra.mxu1 %v1127_v2 }
  0xed   :  { %v1131_v9 = vpack.c.bf16 %v230_v5, %v229_v8 }
  0xef   :  { %1132 = vmatprep.subr.bf16.mxu1 %v1131_v9 }
  0xf0   :  { %1134 = vmatpush3.bf16.msra.mxu1 %v1131_v9 }
  0xf3   :  { %1082 = vmatmul.mubr.msk.f32.vlgmr.msra.gmra.mrb[0].mxu1 %vm287_vm2, %v232_v10  ;;  %v554_v10 = vld [vmem:[%s1680_s8] sm:$0x1] }
  0xf4   :  { %1084 = vmatprep.mubr.msk.f32.mxu1 %vm287_vm2, %v233_v11  ;;  %vm572_vm3 = vcmp.ne.f32.partialorder %v554_v10, 0.0 }
  0xf7   :  { %1085 = vmatmul.mubr.msk.f32.gmra.mrb[2].mxu1 %vm287_vm2, %v234_v12 }
  0xf8   :  { %1087 = vmatprep.mubr.msk.f32.mxu1 %vm287_vm2, %v235_v13  ;;  %v576_v13 = vsub.s32 0, %v1330_v6  ;;  %v1509_v6 = vld [vmem:[%s1682_s6] sm:$0xff] }
  0xfb   :  { %1088 = vmatmul.mubr.msk.f32.gmra.mrb[4].mxu1 %vm287_vm2, %v236_v14  ;;  %v573_v14 = vsel %vm572_vm3, 1, %v1248_v4 }
  0xfc   :  { %1090 = vmatprep.mubr.msk.f32.mxu1 %vm287_vm2, %v237_v15 }
  0xff   :  { %1091 = vmatmul.mubr.msk.f32.gmra.mrb[6].mxu1 %vm287_vm2, %v238_v16  ;;  %v1485_v16 = vrot.slane %v573_v14, %v576_v13 }
 0x101   :  { %vm578_vm4 = vcmp.eq.s32.totalorder %v1485_v16, 1 }
 0x1c6   :  { %v1083_v21 = vpop.f32.mrb[0].mxu1 }
 0x1c7   :  { %v384_v23 = vadd.f32 %v1083_v21, %v255_v18  ;;  %v378_v24 = vpop.f32.mrb[1].mxu1  ;;  %v1249_v21 = vmov 0.0  }
 0x1c8   :  { %v379_v25 = vadd.f32 %v378_v24, %v250_v19  ;;  %v1497_v4 = vsel %vm559_vm1, 1.0, %v1249_v21 }
 0x1c9   :  { %v418_v26 = vmax.f32 %v384_v23, 0.0 }
 0x1ca   :  { %v417_v27 = vmax.f32 %v379_v25, 0.0  ;;  %v1086_v28 = vpop.f32.mrb[2].mxu1 }
 0x1cb   :  { %v394_v29 = vadd.f32 %v1086_v28, %v265_v20  ;;  %v388_v30 = vpop.f32.mrb[3].mxu1 }
 0x1cc   :  { %v1135_v32 = vpack.c.bf16 %v418_v26, %v417_v27  ;;  %v389_v33 = vadd.f32 %v388_v30, %v260_v22  ;;  %v1504_v30 = vld [vmem:[%s1682_s6 + $0x8] sm:$0xff] }
 0x1cd   :  { %v420_v35 = vmax.f32 %v394_v29, 0.0 }
 0x1ce   :  { %v419_v36 = vmax.f32 %v389_v33, 0.0  ;;  %v1089_v37 = vpop.f32.mrb[4].mxu1  ;;  %1136 = vmatprep.subr.bf16.mxu0 %v1135_v32 }
 0x1cf   :  { %v404_v38 = vadd.f32 %v1089_v37, %v275_v31  ;;  %v398_v39 = vpop.f32.mrb[5].mxu1  ;;  %1138 = vmatpush3.bf16.msra.mxu0 %v1135_v32  ;;  %v1514_v31 = vld [vmem:[%s1682_s6 + $0x18] sm:$0xff]  ;;  %v1519_v32 = vld [vmem:[%s1682_s6 + $0x10] sm:$0xff]  ;;  %s1250_s6 = smov 1  }
 0x1d0   :  { %v1139_v40 = vpack.c.bf16 %v420_v35, %v419_v36  ;;  %v399_v41 = vadd.f32 %v398_v39, %v270_v34 }
 0x1d1   :  { %v422_v42 = vmax.f32 %v404_v38, 0.0 }
 0x1d2   :  { %v421_v44 = vmax.f32 %v399_v41, 0.0  ;;  %v1092_v45 = vpop.f32.mrb[6].mxu1  ;;  %1140 = vmatprep.subr.bf16.mxu0 %v1139_v40  ;;  %v430_v41 = vld [vmem:[%s1677_s7 + $0x8] sm:$0xff] }
 0x1d3   :  { %v414_v47 = vadd.f32 %v1092_v45, %v285_v43  ;;  %v408_v48 = vpop.f32.mrb[7].mxu1  ;;  %1142 = vmatpush3.bf16.msra.mxu0 %v1139_v40 }
 0x1d4   :  { %v1143_v49 = vpack.c.bf16 %v422_v42, %v421_v44  ;;  %v409_v50 = vadd.f32 %v408_v48, %v280_v46  ;;  %v1251_v42 = vmov 1  }
 0x1d5   :  { %v424_v51 = vmax.f32 %v414_v47, 0.0 }
 0x1d6   :  { %v423_v52 = vmax.f32 %v409_v50, 0.0  ;;  %1144 = vmatprep.subr.bf16.mxu0 %v1143_v49 }
 0x1d7   :  { %1146 = vmatpush3.bf16.msra.mxu0 %v1143_v49 }
 0x1d8   :  { %v1147_v53 = vpack.c.bf16 %v424_v51, %v423_v52 }
 0x1da   :  { %1148 = vmatprep.subr.bf16.mxu0 %v1147_v53 }
 0x1db   :  { %1150 = vmatpush3.bf16.msra.mxu0 %v1147_v53 }
 0x1de   :  { %1110 = vmatmul.mubr.msk.f32.vlgmr.msra.gmra.mrb[8].mxu0 %vm287_vm2, %v426_v54 }
 0x1df   :  { %1112 = vmatprep.mubr.msk.f32.mxu0 %vm287_vm2, %v427_v55 }
 0x1e2   :  { %1113 = vmatmul.mubr.msk.f32.gmra.mrb[10].mxu0 %vm287_vm2, %v428_v56 }
 0x2b1   :  { %v1469_v57 = vpop.f32.mrb[8].mxu0 }
 0x2b2   :  { %v531_v59 = vpop.f32.mrb[9].mxu0 }
 0x2b3   :  { %v1471_v60 = vadd.f32 %v531_v59, %v436_v58 }
 0x2b5   :  { %v1114_v61 = vpop.f32.mrb[10].mxu0  ;;  %1170 = vtanh.f32 %v1471_v60 }
 0x2b6   :  { %v541_v63 = vpop.f32.mrb[11].mxu0  ;;  %v1477_v2 = vadd.f32 %v1114_v61, %v451_v1 }
 0x2b7   :  { %v1474_v0 = vadd.f32 %v541_v63, %v446_v62 }
 0x2b9   :  { %1172 = vtanh.f32 %v1474_v0 }
 0x2ba   :  { %1174 = vtanh.f32 %v1477_v2 }
 0x2bf   :  { %v1171_v3 = vpop.eup %1170 }
 0x2c0   :  { %v565_v5 = vmul.f32 0.5, %v1171_v3 }
 0x2c2   :  { %v566_v8 = vadd.f32 0.5, %v565_v5 }
 0x2c3   :  { %v1173_v9 = vpop.eup %1172 }
 0x2c4   :  { %v569_v11 = vmul.f32 %v1173_v9, %v566_v8  ;;  %v1175_v12 = vpop.eup %1174 }
 0x2c5   :  { %v567_v15 = vmul.f32 0.5, %v1175_v12 }
 0x2c6   :  { %1176 = vtanh.f32 %v569_v11 }
 0x2c7   :  { %v568_v17 = vadd.f32 0.5, %v567_v15 }
 0x2d0   :  { %v1177_v18 = vpop.eup %1176 }
 0x2d1   :  { %v571_v19 = vmul.f32 %v1177_v18, %v568_v17 }
 0x2d3   :  { %584 = vperm.xlu1 %1162, %v571_v19   ;;  %v579_v20 = vsel %vm578_vm4, %v571_v19, -inf }
 0x2d4   :  { %581 = vst.msk [vmem:[%s1681_s9] sm:$0xff] %vm580_vm5, %v579_v20 }
 0x352   :  { %v585_v22 = vpop.permute.xlu1 %584 }
 0x353   :  { %v587_v23 = vmul.f32 %v1497_v4, %v585_v22 }
 0x355   :  { %v589_v24 = vsel %vm588_vm6, %v587_v23, 0.0 }
 0x356   :  { %v590_v25 = vrot.slane %v589_v24, 4 }
 0x358   :  { %v591_v26 = vadd.f32 %v590_v25, %v589_v24 }
 0x35a   :  { %v592_v27 = vrot.slane %v591_v26, 2 }
 0x35c   :  { %v593_v28 = vadd.f32 %v592_v27, %v591_v26 }
 0x35e   :  { %v594_v29 = vrot.slane %v593_v28, 1 }
 0x360   :  { %v595_v7 = vadd.f32 %v594_v29, %v593_v28 }
 0x362   :  { %v597_v33 = vmul.f32 %v595_v7, %v1504_v30  ;;  %v596_v34 = vmul.f32 %v595_v7, %v1509_v6  ;;  %v599_v37 = vmul.f32 %v595_v7, %v1514_v31  ;;  %v598_v38 = vmul.f32 %v595_v7, %v1519_v32 }
 0x363   :  { %v1252_v7 = vmov 2  }
 0x364   :  { %v603_v35 = vsel %vm588_vm6, %v597_v33, 0.0  ;;  %v600_v36 = vsel %vm588_vm6, %v596_v34, 0.0  ;;  %v609_v39 = vsel %vm588_vm6, %v599_v37, 0.0  ;;  %v606_v40 = vsel %vm588_vm6, %v598_v38, 0.0 }
 0x365   :  { %604 = vadd.xlane.f32.xlu1 %v603_v35  ;;  %601 = vadd.xlane.f32.xlu0 %v600_v36 }
 0x369   :  { %610 = vadd.xlane.f32.xlu1 %v609_v39  ;;  %607 = vadd.xlane.f32.xlu0 %v606_v40 }
 0x37a   :  { %627 = vrot.lane.b32.xlu1 %v569_v11, %s1250_s6 }
 0x37f   :  { %440 = vperm.xlu0 %1161, %v430_v41  }
 0x383   :  { %1163 = vset.pattern.permute.xlu0 %v1251_v42 }
 0x3f2   :  { %v602_v43 = vpop.xlane.xlu0 %601  ;;  %v605_v48 = vpop.xlane.xlu1 %604 }
 0x3f3   :  { %v612_v44 = vadd.f32 %v602_v43, %v1471_v60 }
 0x3f5   :  { %1178 = vtanh.f32 %v612_v44 }
 0x3f6   :  { %v608_v45 = vpop.xlane.xlu0 %607  ;;  %v611_v52 = vpop.xlane.xlu1 %610 }
 0x3f7   :  { %v614_v49 = vadd.f32 %v608_v45, %v1474_v0  ;;  %v615_v54 = vadd.f32 %v611_v52, %v1477_v2 }
 0x3fe   :  { %v441_v46 = vpop.permute.xlu0 %440 }
 0x3ff   :  { %v1535_v47 = vadd.f32 %v1469_v57, %v441_v46  ;;  %v1179_v51 = vpop.eup %1178  ;;  %v628_v57 = vpop.permute.xlu1 %627 }
 0x400   :  { %v620_v53 = vmul.f32 0.5, %v1179_v51 }
 0x401   :  { %v613_v50 = vadd.f32 %v605_v48, %v1535_v47 }
 0x402   :  { %v621_v56 = vadd.f32 0.5, %v620_v53 }
 0x403   :  { %1180 = vtanh.f32 %v613_v50 }
 0x404   :  { %1182 = vtanh.f32 %v614_v49 }
 0x405   :  { %1184 = vtanh.f32 %v615_v54 }
 0x40d   :  { %v1181_v55 = vpop.eup %1180 }
 0x40e   :  { %v622_v58 = vmul.f32 0.5, %v1181_v55  ;;  %v1183_v59 = vpop.eup %1182 }
 0x40f   :  { %v631_v62 = vmul.f32 %v1183_v59, %v621_v56  ;;  %v1185_v3 = vpop.eup %1184 }
 0x410   :  { %v623_v61 = vadd.f32 0.5, %v622_v58  ;;  %v624_v5 = vmul.f32 0.5, %v1185_v3 }
 0x412   :  { %v630_v63 = vmul.f32 %v628_v57, %v623_v61  ;;  %v625_v8 = vadd.f32 0.5, %v624_v5 }
 0x414   :  { %v632_v1 = vadd.f32 %v631_v62, %v630_v63 }
 0x416   :  { %1186 = vtanh.f32 %v632_v1 }
 0x420   :  { %v1187_v9 = vpop.eup %1186 }
 0x421   :  { %v634_v10 = vmul.f32 %v1187_v9, %v625_v8 }
 0x423   :  { %640 = vperm.xlu0 %1163, %v634_v10   ;;  %v635_v11 = vsel %vm578_vm4, %v634_v10, -inf }
 0x424   :  { %637 = vst.msk [vmem:[%s1681_s9] sm:$0xff] %vm636_vm7, %v635_v11 }
 0x427   :  { %1164 = vset.pattern.permute.xlu0 %v1252_v7 }
 0x4a2   :  { %v641_v12 = vpop.permute.xlu0 %640 }
 0x4a3   :  { %v643_v13 = vmul.f32 %v1497_v4, %v641_v12 }
 0x4a5   :  { %v644_v14 = vsel %vm588_vm6, %v643_v13, 0.0 }
 0x4a6   :  { %v645_v15 = vrot.slane %v644_v14, 4 }
 0x4a8   :  { %v646_v17 = vadd.f32 %v645_v15, %v644_v14 }
 0x4aa   :  { %v647_v18 = vrot.slane %v646_v17, 2 }
 0x4ac   :  { %v648_v19 = vadd.f32 %v647_v18, %v646_v17 }
 0x4ae   :  { %v649_v20 = vrot.slane %v648_v19, 1 }
 0x4b0   :  { %v650_v21 = vadd.f32 %v649_v20, %v648_v19  ;;  %v1253_v19 = vmov 3  }
 0x4b2   :  { %v652_v22 = vmul.f32 %v650_v21, %v1504_v30  ;;  %v651_v23 = vmul.f32 %v650_v21, %v1509_v6  ;;  %v654_v26 = vmul.f32 %v650_v21, %v1514_v31  ;;  %v653_v27 = vmul.f32 %v650_v21, %v1519_v32 }
 0x4b4   :  { %v658_v24 = vsel %vm588_vm6, %v652_v22, 0.0  ;;  %v655_v25 = vsel %vm588_vm6, %v651_v23, 0.0  ;;  %v664_v28 = vsel %vm588_vm6, %v654_v26, 0.0  ;;  %v661_v29 = vsel %vm588_vm6, %v653_v27, 0.0 }
 0x4b5   :  { %659 = vadd.xlane.f32.xlu0 %v658_v24  ;;  %656 = vadd.xlane.f32.xlu1 %v655_v25 }
 0x4b9   :  { %665 = vadd.xlane.f32.xlu0 %v664_v28  ;;  %662 = vadd.xlane.f32.xlu1 %v661_v29 }
 0x4ca   :  { %682 = vrot.lane.b32.xlu1 %v632_v1, %s1250_s6 }
 0x542   :  { %v660_v33 = vpop.xlane.xlu0 %659  ;;  %v657_v34 = vpop.xlane.xlu1 %656 }
 0x543   :  { %v668_v35 = vadd.f32 %v660_v33, %v1535_v47  ;;  %v667_v36 = vadd.f32 %v657_v34, %v1471_v60 }
 0x545   :  { %1188 = vtanh.f32 %v668_v35 }
 0x546   :  { %1190 = vtanh.f32 %v667_v36  ;;  %v663_v37 = vpop.xlane.xlu1 %662  ;;  %v666_v39 = vpop.xlane.xlu0 %665 }
 0x547   :  { %v669_v38 = vadd.f32 %v663_v37, %v1474_v0  ;;  %v670_v40 = vadd.f32 %v666_v39, %v1477_v2 }
 0x549   :  { %1192 = vtanh.f32 %v669_v38 }
 0x54a   :  { %1194 = vtanh.f32 %v670_v40  ;;  %v683_v48 = vpop.permute.xlu1 %682 }
 0x54f   :  { %v1189_v41 = vpop.eup %1188 }
 0x550   :  { %v1191_v42 = vpop.eup %1190  ;;  %v677_v43 = vmul.f32 0.5, %v1189_v41 }
 0x551   :  { %v675_v44 = vmul.f32 0.5, %v1191_v42 }
 0x552   :  { %v678_v45 = vadd.f32 0.5, %v677_v43 }
 0x553   :  { %v676_v46 = vadd.f32 0.5, %v675_v44  ;;  %v1193_v49 = vpop.eup %1192 }
 0x554   :  { %v685_v50 = vmul.f32 %v683_v48, %v678_v45  ;;  %v1195_v53 = vpop.eup %1194 }
 0x555   :  { %v686_v51 = vmul.f32 %v1193_v49, %v676_v46  ;;  %v679_v54 = vmul.f32 0.5, %v1195_v53 }
 0x557   :  { %v687_v52 = vadd.f32 %v686_v51, %v685_v50  ;;  %v680_v55 = vadd.f32 0.5, %v679_v54 }
 0x559   :  { %1196 = vtanh.f32 %v687_v52 }
 0x563   :  { %v1197_v56 = vpop.eup %1196 }
 0x564   :  { %v689_v58 = vmul.f32 %v1197_v56, %v680_v55 }
 0x566   :  { %695 = vperm.xlu0 %1164, %v689_v58   ;;  %v690_v59 = vsel %vm578_vm4, %v689_v58, -inf }
 0x567   :  { %692 = vst.msk [vmem:[%s1681_s9] sm:$0xff] %vm691_vm8, %v690_v59 }
 0x56a   :  { %1165 = vset.pattern.permute.xlu0 %v1253_v19 }
 0x5e5   :  { %v696_v61 = vpop.permute.xlu0 %695 }
 0x5e6   :  { %v698_v57 = vmul.f32 %v1497_v4, %v696_v61 }
 0x5e8   :  { %v699_v62 = vsel %vm588_vm6, %v698_v57, 0.0 }
 0x5e9   :  { %v700_v63 = vrot.slane %v699_v62, 4 }
 0x5eb   :  { %v701_v1 = vadd.f32 %v700_v63, %v699_v62 }
 0x5ed   :  { %v702_v3 = vrot.slane %v701_v1, 2 }
 0x5ef   :  { %v703_v5 = vadd.f32 %v702_v3, %v701_v1 }
 0x5f1   :  { %v704_v8 = vrot.slane %v703_v5, 1 }
 0x5f3   :  { %v705_v9 = vadd.f32 %v704_v8, %v703_v5  ;;  %v1254_v5 = vmov 4  }
 0x5f4   :  { %1166 = vset.pattern.permute.xlu1 %v1254_v5 }
 0x5f5   :  { %v707_v10 = vmul.f32 %v705_v9, %v1504_v30  ;;  %v706_v11 = vmul.f32 %v705_v9, %v1509_v6  ;;  %v708_v14 = vmul.f32 %v705_v9, %v1519_v32  ;;  %v709_v17 = vmul.f32 %v705_v9, %v1514_v31 }
 0x5f7   :  { %v713_v12 = vsel %vm588_vm6, %v707_v10, 0.0  ;;  %v710_v13 = vsel %vm588_vm6, %v706_v11, 0.0  ;;  %v716_v15 = vsel %vm588_vm6, %v708_v14, 0.0  ;;  %v719_v18 = vsel %vm588_vm6, %v709_v17, 0.0 }
 0x5f8   :  { %714 = vadd.xlane.f32.xlu0 %v713_v12  ;;  %711 = vadd.xlane.f32.xlu1 %v710_v13 }
 0x5fc   :  { %717 = vadd.xlane.f32.xlu1 %v716_v15 }
 0x600   :  { %720 = vadd.xlane.f32.xlu1 %v719_v18 }
 0x611   :  { %737 = vrot.lane.b32.xlu1 %v687_v52, %s1250_s6 }
 0x685   :  { %v715_v20 = vpop.xlane.xlu0 %714  ;;  %v712_v21 = vpop.xlane.xlu1 %711 }
 0x686   :  { %v723_v22 = vadd.f32 %v715_v20, %v1535_v47  ;;  %v722_v23 = vadd.f32 %v712_v21, %v1471_v60 }
 0x688   :  { %1198 = vtanh.f32 %v723_v22 }
 0x689   :  { %1200 = vtanh.f32 %v722_v23  ;;  %v718_v24 = vpop.xlane.xlu1 %717 }
 0x68a   :  { %v724_v25 = vadd.f32 %v718_v24, %v1474_v0 }
 0x68c   :  { %1202 = vtanh.f32 %v724_v25 }
 0x68d   :  { %v721_v26 = vpop.xlane.xlu1 %720 }
 0x68e   :  { %v725_v27 = vadd.f32 %v721_v26, %v1477_v2 }
 0x690   :  { %1204 = vtanh.f32 %v725_v27 }
 0x691   :  { %v738_v37 = vpop.permute.xlu1 %737 }
 0x692   :  { %v1199_v28 = vpop.eup %1198 }
 0x693   :  { %v1201_v29 = vpop.eup %1200  ;;  %v732_v7 = vmul.f32 0.5, %v1199_v28 }
 0x694   :  { %v730_v33 = vmul.f32 0.5, %v1201_v29 }
 0x695   :  { %v733_v34 = vadd.f32 0.5, %v732_v7 }
 0x696   :  { %v1203_v35 = vpop.eup %1202  ;;  %v731_v36 = vadd.f32 0.5, %v730_v33 }
 0x697   :  { %v740_v38 = vmul.f32 %v738_v37, %v733_v34 }
 0x698   :  { %v741_v39 = vmul.f32 %v1203_v35, %v731_v36 }
 0x69a   :  { %v742_v40 = vadd.f32 %v741_v39, %v740_v38  ;;  %v1205_v41 = vpop.eup %1204 }
 0x69b   :  { %v734_v42 = vmul.f32 0.5, %v1205_v41 }
 0x69c   :  { %1206 = vtanh.f32 %v742_v40 }
 0x69d   :  { %v735_v43 = vadd.f32 0.5, %v734_v42 }
 0x6a6   :  { %v1207_v44 = vpop.eup %1206 }
 0x6a7   :  { %v744_v45 = vmul.f32 %v1207_v44, %v735_v43 }
 0x6a9   :  { %750 = vperm.xlu0 %1165, %v744_v45   ;;  %v745_v46 = vsel %vm578_vm4, %v744_v45, -inf }
 0x6aa   :  { %747 = vst.msk [vmem:[%s1681_s9] sm:$0xff] %vm746_vm9, %v745_v46 }
 0x728   :  { %v751_v48 = vpop.permute.xlu0 %750 }
 0x729   :  { %v753_v49 = vmul.f32 %v1497_v4, %v751_v48 }
 0x72b   :  { %v754_v50 = vsel %vm588_vm6, %v753_v49, 0.0 }
 0x72c   :  { %v755_v51 = vrot.slane %v754_v50, 4 }
 0x72e   :  { %v756_v52 = vadd.f32 %v755_v51, %v754_v50 }
 0x730   :  { %v757_v53 = vrot.slane %v756_v52, 2 }
 0x732   :  { %v758_v54 = vadd.f32 %v757_v53, %v756_v52 }
 0x734   :  { %v759_v55 = vrot.slane %v758_v54, 1 }
 0x736   :  { %v760_v56 = vadd.f32 %v759_v55, %v758_v54  ;;  %v1255_v54 = vmov 5  }
 0x738   :  { %v764_v58 = vmul.f32 %v760_v56, %v1514_v31  ;;  %v761_v59 = vmul.f32 %v760_v56, %v1509_v6  ;;  %v762_v62 = vmul.f32 %v760_v56, %v1504_v30  ;;  %v763_v1 = vmul.f32 %v760_v56, %v1519_v32 }
 0x73a   :  { %v774_v61 = vsel %vm588_vm6, %v764_v58, 0.0  ;;  %v765_v57 = vsel %vm588_vm6, %v761_v59, 0.0  ;;  %v768_v63 = vsel %vm588_vm6, %v762_v62, 0.0  ;;  %v771_v3 = vsel %vm588_vm6, %v763_v1, 0.0 }
 0x73b   :  { %775 = vadd.xlane.f32.xlu0 %v774_v61  ;;  %766 = vadd.xlane.f32.xlu1 %v765_v57 }
 0x73f   :  { %769 = vadd.xlane.f32.xlu1 %v768_v63 }
 0x743   :  { %772 = vadd.xlane.f32.xlu1 %v771_v3 }
 0x754   :  { %792 = vrot.lane.b32.xlu1 %v742_v40, %s1250_s6 }
 0x7c8   :  { %v767_v8 = vpop.xlane.xlu1 %766  ;;  %v776_v14 = vpop.xlane.xlu0 %775 }
 0x7c9   :  { %v777_v9 = vadd.f32 %v767_v8, %v1471_v60  ;;  %v780_v17 = vadd.f32 %v776_v14, %v1477_v2 }
 0x7cb   :  { %1208 = vtanh.f32 %v777_v9 }
 0x7cc   :  { %v770_v10 = vpop.xlane.xlu1 %769 }
 0x7cd   :  { %v778_v11 = vadd.f32 %v770_v10, %v1535_v47 }
 0x7cf   :  { %1210 = vtanh.f32 %v778_v11 }
 0x7d0   :  { %v773_v12 = vpop.xlane.xlu1 %772 }
 0x7d1   :  { %v779_v13 = vadd.f32 %v773_v12, %v1474_v0 }
 0x7d3   :  { %1212 = vtanh.f32 %v779_v13 }
 0x7d4   :  { %1214 = vtanh.f32 %v780_v17  ;;  %v793_v24 = vpop.permute.xlu1 %792 }
 0x7d5   :  { %v1209_v15 = vpop.eup %1208 }
 0x7d6   :  { %v785_v18 = vmul.f32 0.5, %v1209_v15 }
 0x7d8   :  { %v786_v21 = vadd.f32 0.5, %v785_v18 }
 0x7d9   :  { %v1211_v19 = vpop.eup %1210 }
 0x7da   :  { %v787_v20 = vmul.f32 0.5, %v1211_v19 }
 0x7dc   :  { %v788_v22 = vadd.f32 0.5, %v787_v20 }
 0x7dd   :  { %v1213_v23 = vpop.eup %1212 }
 0x7de   :  { %v796_v25 = vmul.f32 %v1213_v23, %v786_v21  ;;  %v795_v26 = vmul.f32 %v793_v24, %v788_v22  ;;  %v1215_v28 = vpop.eup %1214 }
 0x7df   :  { %v789_v29 = vmul.f32 0.5, %v1215_v28 }
 0x7e0   :  { %v797_v27 = vadd.f32 %v796_v25, %v795_v26 }
 0x7e1   :  { %v790_v7 = vadd.f32 0.5, %v789_v29 }
 0x7e2   :  { %1216 = vtanh.f32 %v797_v27 }
 0x7ec   :  { %v1217_v33 = vpop.eup %1216 }
 0x7ed   :  { %v799_v34 = vmul.f32 %v1217_v33, %v790_v7 }
 0x7ef   :  { %805 = vperm.xlu1 %1166, %v799_v34   ;;  %v800_v35 = vsel %vm578_vm4, %v799_v34, -inf }
 0x7f0   :  { %802 = vst.msk [vmem:[%s1681_s9] sm:$0xff] %vm801_vm10, %v800_v35 }
 0x7f3   :  { %1167 = vset.pattern.permute.xlu1 %v1255_v54 }
 0x86e   :  { %v806_v36 = vpop.permute.xlu1 %805 }
 0x86f   :  { %v808_v37 = vmul.f32 %v1497_v4, %v806_v36 }
 0x871   :  { %v809_v38 = vsel %vm588_vm6, %v808_v37, 0.0 }
 0x872   :  { %v810_v39 = vrot.slane %v809_v38, 4 }
 0x874   :  { %v811_v40 = vadd.f32 %v810_v39, %v809_v38 }
 0x876   :  { %v812_v41 = vrot.slane %v811_v40, 2 }
 0x878   :  { %v813_v42 = vadd.f32 %v812_v41, %v811_v40 }
 0x87a   :  { %v814_v43 = vrot.slane %v813_v42, 1 }
 0x87c   :  { %v815_v44 = vadd.f32 %v814_v43, %v813_v42  ;;  %v1256_v42 = vmov 6  }
 0x87d   :  { %1169 = vset.pattern.permute.xlu0 %v1256_v42 }
 0x87e   :  { %v817_v45 = vmul.f32 %v815_v44, %v1504_v30  ;;  %v816_v46 = vmul.f32 %v815_v44, %v1509_v6  ;;  %v818_v50 = vmul.f32 %v815_v44, %v1519_v32  ;;  %v819_v52 = vmul.f32 %v815_v44, %v1514_v31 }
 0x880   :  { %v823_v48 = vsel %vm588_vm6, %v817_v45, 0.0  ;;  %v820_v49 = vsel %vm588_vm6, %v816_v46, 0.0  ;;  %v826_v51 = vsel %vm588_vm6, %v818_v50, 0.0  ;;  %v829_v53 = vsel %vm588_vm6, %v819_v52, 0.0 }
 0x881   :  { %824 = vadd.xlane.f32.xlu0 %v823_v48  ;;  %821 = vadd.xlane.f32.xlu1 %v820_v49 }
 0x885   :  { %827 = vadd.xlane.f32.xlu0 %v826_v51 }
 0x889   :  { %830 = vadd.xlane.f32.xlu0 %v829_v53 }
 0x89f   :  { %847 = vrot.lane.b32.xlu0 %v797_v27, %s1250_s6 }
 0x90e   :  { %v825_v55 = vpop.xlane.xlu0 %824  ;;  %v822_v56 = vpop.xlane.xlu1 %821 }
 0x90f   :  { %v833_v58 = vadd.f32 %v825_v55, %v1535_v47  ;;  %v832_v59 = vadd.f32 %v822_v56, %v1471_v60 }
 0x911   :  { %1218 = vtanh.f32 %v833_v58 }
 0x912   :  { %1220 = vtanh.f32 %v832_v59  ;;  %v828_v61 = vpop.xlane.xlu0 %827 }
 0x913   :  { %v834_v57 = vadd.f32 %v828_v61, %v1474_v0 }
 0x915   :  { %1222 = vtanh.f32 %v834_v57 }
 0x916   :  { %v831_v62 = vpop.xlane.xlu0 %830 }
 0x917   :  { %v835_v63 = vadd.f32 %v831_v62, %v1477_v2 }
 0x919   :  { %1224 = vtanh.f32 %v835_v63 }
 0x91a   :  { %v848_v12 = vpop.permute.xlu0 %847 }
 0x91b   :  { %v1219_v1 = vpop.eup %1218 }
 0x91c   :  { %v1221_v3 = vpop.eup %1220  ;;  %v842_v5 = vmul.f32 0.5, %v1219_v1 }
 0x91d   :  { %v840_v8 = vmul.f32 0.5, %v1221_v3 }
 0x91e   :  { %v843_v9 = vadd.f32 0.5, %v842_v5 }
 0x91f   :  { %v1223_v10 = vpop.eup %1222  ;;  %v841_v11 = vadd.f32 0.5, %v840_v8 }
 0x920   :  { %v850_v13 = vmul.f32 %v848_v12, %v843_v9 }
 0x921   :  { %v851_v14 = vmul.f32 %v1223_v10, %v841_v11 }
 0x923   :  { %v852_v15 = vadd.f32 %v851_v14, %v850_v13  ;;  %v1225_v17 = vpop.eup %1224 }
 0x924   :  { %v844_v18 = vmul.f32 0.5, %v1225_v17 }
 0x925   :  { %1226 = vtanh.f32 %v852_v15 }
 0x926   :  { %v845_v19 = vadd.f32 0.5, %v844_v18 }
 0x92f   :  { %v1227_v20 = vpop.eup %1226 }
 0x930   :  { %v854_v21 = vmul.f32 %v1227_v20, %v845_v19 }
 0x932   :  { %860 = vperm.xlu1 %1167, %v854_v21   ;;  %v855_v22 = vsel %vm578_vm4, %v854_v21, -inf }
 0x933   :  { %857 = vst.msk [vmem:[%s1681_s9] sm:$0xff] %vm856_vm11, %v855_v22 }
 0x936   :  { %1168 = vset.pattern.permute.xlu1 %v1256_v42 }
 0x9b1   :  { %v861_v23 = vpop.permute.xlu1 %860 }
 0x9b2   :  { %v863_v24 = vmul.f32 %v1497_v4, %v861_v23 }
 0x9b4   :  { %v864_v25 = vsel %vm588_vm6, %v863_v24, 0.0 }
 0x9b5   :  { %v865_v26 = vrot.slane %v864_v25, 4 }
 0x9b7   :  { %v866_v27 = vadd.f32 %v865_v26, %v864_v25 }
 0x9b9   :  { %v867_v28 = vrot.slane %v866_v27, 2 }
 0x9bb   :  { %v868_v29 = vadd.f32 %v867_v28, %v866_v27 }
 0x9bd   :  { %v869_v7 = vrot.slane %v868_v29, 1 }
 0x9bf   :  { %v870_v33 = vadd.f32 %v869_v7, %v868_v29 }
 0x9c1   :  { %v872_v34 = vmul.f32 %v870_v33, %v1504_v30  ;;  %v871_v35 = vmul.f32 %v870_v33, %v1509_v6  ;;  %v873_v38 = vmul.f32 %v870_v33, %v1519_v32  ;;  %v874_v40 = vmul.f32 %v870_v33, %v1514_v31 }
 0x9c3   :  { %v878_v36 = vsel %vm588_vm6, %v872_v34, 0.0  ;;  %v875_v37 = vsel %vm588_vm6, %v871_v35, 0.0  ;;  %v881_v39 = vsel %vm588_vm6, %v873_v38, 0.0  ;;  %v884_v41 = vsel %vm588_vm6, %v874_v40, 0.0 }
 0x9c4   :  { %879 = vadd.xlane.f32.xlu1 %v878_v36  ;;  %876 = vadd.xlane.f32.xlu0 %v875_v37 }
 0x9c8   :  { %882 = vadd.xlane.f32.xlu0 %v881_v39 }
 0x9cc   :  { %885 = vadd.xlane.f32.xlu0 %v884_v41 }
 0x9e2   :  { %902 = vrot.lane.b32.xlu0 %v852_v15, %s1250_s6 }
 0xa51   :  { %v880_v43 = vpop.xlane.xlu1 %879  ;;  %v877_v44 = vpop.xlane.xlu0 %876 }
 0xa52   :  { %v888_v45 = vadd.f32 %v880_v43, %v1535_v47  ;;  %v887_v46 = vadd.f32 %v877_v44, %v1471_v60 }
 0xa54   :  { %1228 = vtanh.f32 %v888_v45 }
 0xa55   :  { %1230 = vtanh.f32 %v887_v46  ;;  %v883_v48 = vpop.xlane.xlu0 %882 }
 0xa56   :  { %v889_v49 = vadd.f32 %v883_v48, %v1474_v0 }
 0xa58   :  { %1232 = vtanh.f32 %v889_v49 }
 0xa59   :  { %v886_v50 = vpop.xlane.xlu0 %885 }
 0xa5a   :  { %v890_v51 = vadd.f32 %v886_v50, %v1477_v2 }
 0xa5c   :  { %1234 = vtanh.f32 %v890_v51 }
 0xa5d   :  { %v903_v61 = vpop.permute.xlu0 %902 }
 0xa5e   :  { %v1229_v52 = vpop.eup %1228 }
 0xa5f   :  { %v1231_v53 = vpop.eup %1230  ;;  %v897_v54 = vmul.f32 0.5, %v1229_v52 }
 0xa60   :  { %v895_v55 = vmul.f32 0.5, %v1231_v53 }
 0xa61   :  { %v898_v56 = vadd.f32 0.5, %v897_v54 }
 0xa62   :  { %v1233_v58 = vpop.eup %1232  ;;  %v896_v59 = vadd.f32 0.5, %v895_v55 }
 0xa63   :  { %v905_v57 = vmul.f32 %v903_v61, %v898_v56 }
 0xa64   :  { %v906_v62 = vmul.f32 %v1233_v58, %v896_v59 }
 0xa66   :  { %v907_v63 = vadd.f32 %v906_v62, %v905_v57  ;;  %v1235_v1 = vpop.eup %1234 }
 0xa67   :  { %v899_v3 = vmul.f32 0.5, %v1235_v1 }
 0xa68   :  { %1236 = vtanh.f32 %v907_v63 }
 0xa69   :  { %v900_v5 = vadd.f32 0.5, %v899_v3 }
 0xa72   :  { %v1237_v8 = vpop.eup %1236 }
 0xa73   :  { %v909_v9 = vmul.f32 %v1237_v8, %v900_v5 }
 0xa75   :  { %915 = vperm.xlu1 %1168, %v909_v9   ;;  %v910_v10 = vsel %vm578_vm4, %v909_v9, -inf }
 0xa76   :  { %912 = vst.msk [vmem:[%s1681_s9] sm:$0xff] %vm911_vm12, %v910_v10 }
 0xaf4   :  { %v916_v11 = vpop.permute.xlu1 %915 }
 0xaf5   :  { %v918_v12 = vmul.f32 %v1497_v4, %v916_v11 }
 0xaf7   :  { %v919_v13 = vsel %vm588_vm6, %v918_v12, 0.0 }
 0xaf8   :  { %v920_v14 = vrot.slane %v919_v13, 4 }
 0xafa   :  { %v921_v15 = vadd.f32 %v920_v14, %v919_v13 }
 0xafc   :  { %v922_v17 = vrot.slane %v921_v15, 2 }
 0xafe   :  { %v923_v18 = vadd.f32 %v922_v17, %v921_v15 }
 0xb00   :  { %v924_v19 = vrot.slane %v923_v18, 1 }
 0xb02   :  { %v925_v20 = vadd.f32 %v924_v19, %v923_v18 }
 0xb04   :  { %v927_v21 = vmul.f32 %v925_v20, %v1504_v30  ;;  %v926_v22 = vmul.f32 %v925_v20, %v1509_v6  ;;  %v928_v25 = vmul.f32 %v925_v20, %v1519_v32  ;;  %v929_v26 = vmul.f32 %v925_v20, %v1514_v31 }
 0xb06   :  { %v933_v23 = vsel %vm588_vm6, %v927_v21, 0.0  ;;  %v930_v24 = vsel %vm588_vm6, %v926_v22, 0.0  ;;  %v936_v4 = vsel %vm588_vm6, %v928_v25, 0.0  ;;  %v939_v27 = vsel %vm588_vm6, %v929_v26, 0.0 }
 0xb07   :  { %934 = vadd.xlane.f32.xlu1 %v933_v23  ;;  %931 = vadd.xlane.f32.xlu0 %v930_v24 }
 0xb0b   :  { %937 = vadd.xlane.f32.xlu0 %v936_v4 }
 0xb0f   :  { %940 = vadd.xlane.f32.xlu0 %v939_v27 }
 0xb18   :  { %957 = vrot.lane.b32.xlu1 %v907_v63, %s1250_s6 }
 0xb94   :  { %v935_v30 = vpop.xlane.xlu1 %934  ;;  %v932_v6 = vpop.xlane.xlu0 %931 }
 0xb95   :  { %v943_v28 = vadd.f32 %v935_v30, %v1535_v47  ;;  %v942_v29 = vadd.f32 %v932_v6, %v1471_v60 }
 0xb97   :  { %1238 = vtanh.f32 %v943_v28 }
 0xb98   :  { %1240 = vtanh.f32 %v942_v29  ;;  %v938_v32 = vpop.xlane.xlu0 %937  ;;  %v958_v47 = vpop.permute.xlu1 %957 }
 0xb99   :  { %v944_v7 = vadd.f32 %v938_v32, %v1474_v0 }
 0xb9b   :  { %1242 = vtanh.f32 %v944_v7 }
 0xb9c   :  { %v941_v33 = vpop.xlane.xlu0 %940 }
 0xb9d   :  { %v945_v31 = vadd.f32 %v941_v33, %v1477_v2 }
 0xb9f   :  { %1244 = vtanh.f32 %v945_v31 }
 0xba1   :  { %v1239_v34 = vpop.eup %1238 }
 0xba2   :  { %v1241_v35 = vpop.eup %1240  ;;  %v952_v36 = vmul.f32 0.5, %v1239_v34 }
 0xba3   :  { %v950_v37 = vmul.f32 0.5, %v1241_v35 }
 0xba4   :  { %v953_v38 = vadd.f32 0.5, %v952_v36 }
 0xba5   :  { %v1243_v39 = vpop.eup %1242  ;;  %v951_v40 = vadd.f32 0.5, %v950_v37 }
 0xba6   :  { %v960_v41 = vmul.f32 %v958_v47, %v953_v38 }
 0xba7   :  { %v961_v60 = vmul.f32 %v1243_v39, %v951_v40 }
 0xba9   :  { %v962_v42 = vadd.f32 %v961_v60, %v960_v41  ;;  %v1245_v0 = vpop.eup %1244 }
 0xbaa   :  { %v954_v43 = vmul.f32 0.5, %v1245_v0 }
 0xbab   :  { %974 = vrot.lane.b32.xlu1 %v962_v42, %s1257_s12  ;;  %1246 = vtanh.f32 %v962_v42 }
 0xbac   :  { %v955_v44 = vadd.f32 0.5, %v954_v43 }
 0xbb5   :  { %v1247_v45 = vpop.eup %1246 }
 0xbb6   :  { %v964_v2 = vmul.f32 %v1247_v45, %v955_v44 }
 0xbb8   :  { %969 = vrot.lane.b32.xlu0 %v964_v2, %s1257_s12  ;;  %v965_v46 = vsel %vm578_vm4, %v964_v2, -inf }
 0xbb9   :  { %967 = vst.msk [vmem:[%s1681_s9] sm:$0xff] %vm966_vm13, %v965_v46 }
 0xc1d   :  { %v975_v48 = vpop.permute.xlu1 %974 }
 0xc1e   :  { %977 = vst.msk [vmem:[%s1683_s11] sm:$0xff] %vm580_vm5, %v975_v48 }
 0xc2a   :  { %v970_v49 = vpop.permute.xlu0 %969 }
 0xc2b   :  { %972 = vst.msk [vmem:[%s1684_s10] sm:$0xff] %vm580_vm5, %v970_v49 }

</bundles_post_ra>
